<compile_context>
chip_gen: v5e
topology: v5e:2x2
jax: 0.10.0
libtpu: 0.0.40
codegen_flags: <defaults>
</compile_context>

<pallas_src>
import functools

import jax
import jax.numpy as jnp
from jax.experimental import pallas as pl
from jax.experimental.pallas import tpu as pltpu


def _resblk_kernel(x_ref, mask_ref, wf_ref, bf_ref, w2_ref, b2_ref,
                   w3_ref, b3_ref, o_ref, a1_ref, a2_ref,
                   *, tap_offsets, margin, c1):
    """One grid step = G lane-packed images. All tensors are channels-major, lane-dense."""
    n = x_ref.shape[-1]                         # G * Npad packed lanes
    x = x_ref[0]                                # (Cin, n) bf16
    keep = mask_ref[...] > 0.5                  # (1, n) bool: interior pixels only

    def masked_relu(h):
        # where-masking (not multiply): garbage in the never-written scratch margins can
        # only reach masked positions and is forced to exactly 0 here (NaN-safe).
        return jnp.where(keep, jnp.maximum(h, 0.0), 0.0)

    def conv3x3(act_ref, w_ref, b_ref):
        # 9 accumulating matmuls, one per lane-shifted tap view of the bf16 scratch.
        # MXU has huge slack at these sizes; avoids the (9C, n) im2col concat + cast.
        acc = None
        for t, d in enumerate(tap_offsets):
            tap = act_ref[:, margin + d: margin + d + n]            # (C, n) bf16, static slice
            part = jnp.dot(w_ref[t], tap, preferred_element_type=jnp.float32)
            acc = part if acc is None else acc + part
        return acc + b_ref[...]

    # --- fused 1x1 convs: net[0] conv(+BN) and shortcut conv(+BN) in ONE matmul ------
    hf = jnp.dot(wf_ref[...], x, preferred_element_type=jnp.float32) + bf_ref[...]
    h1 = masked_relu(hf[:c1])                   # (C1, n): ReLU + enforce zero pad ring
    sc = hf[c1:]                                # (C3, n): shortcut (ring cropped later)
    a1_ref[:, margin:margin + n] = h1.astype(a1_ref.dtype)   # 128-aligned lane-dense store

    # --- net[1]: 3x3 conv (+ folded BN) + ReLU ---------------------------------------
    h2 = masked_relu(conv3x3(a1_ref, w2_ref, b2_ref))
    a2_ref[:, margin:margin + n] = h2.astype(a2_ref.dtype)

    # --- net[2]: 3x3 conv (+ folded BN), NO ReLU (layers.pop() removed it) -----------
    h3 = conv3x3(a2_ref, w3_ref, b3_ref)

    # --- residual add + final ReLU (pad-ring / lane-padding columns cropped in wrapper)
    o_ref[0] = jnp.maximum(sc + h3, 0.0).astype(o_ref.dtype)


def resblk_forward(x_nchw, folded_params, images_per_step=None):
    """x_nchw: (B, Cin, H, W) f32. folded_params: [(w_hwio, b)] for
    [net conv1 (1x1), net conv2 (3x3), net conv3 (3x3), shortcut conv (1x1)].
    Returns (B, C3, H, W) bf16 (cast in the caller if f32 is required)."""
    (w1, b1), (w2, b2), (w3, b3), (ws, bs) = folded_params
    B, Cin, H, W = x_nchw.shape
    Hp, Wp = H + 2, W + 2
    Np = Hp * Wp
    Npad = pl.cdiv(Np, 128) * 128               # lane-pad so every row is whole vregs
    C1, C2, C3 = w1.shape[-1], w2.shape[-1], w3.shape[-1]

    # Images packed per grid step (lane-concatenated, each keeps its own pad ring).
    # Default: whole batch in one step. For large B pick a divisor so B//G >= 4
    # (two v7x TensorCores x double-buffered pipelining) while keeping G*Npad modest.
    G = B if images_per_step is None else images_per_step
    assert B % G == 0, "batch must be divisible by images_per_step"
    n = G * Npad
    margin = pl.cdiv(Wp + 1, 128) * 128         # tap halo; 128-aligned stash stores

    # ---- plain-JAX layout glue (pads/reshapes + one transpose to interleave images) --
    xp = jnp.pad(x_nchw, ((0, 0), (0, 0), (1, 1), (1, 1))).reshape(B, Cin, Np)
    xp = jnp.pad(xp, ((0, 0), (0, 0), (0, Npad - Np)))
    xp = xp.reshape(B // G, G, Cin, Npad).transpose(0, 2, 1, 3)
    xp = xp.reshape(B // G, Cin, n).astype(jnp.bfloat16)        # bf16 halves input DMA

    in_h = (jnp.arange(Hp) >= 1) & (jnp.arange(Hp) <= H)
    in_w = (jnp.arange(Wp) >= 1) & (jnp.arange(Wp) <= W)
    m = jnp.pad((in_h[:, None] & in_w[None, :]).reshape(Np), (0, Npad - Np))
    mask = jnp.tile(m, (G,)).reshape(1, n).astype(jnp.float32)

    # weights: fused 1x1 (net conv1 row-stacked on shortcut conv); 3x3 as (9, Cout, Cin)
    wf = jnp.concatenate([w1[0, 0].T, ws[0, 0].T], axis=0).astype(jnp.bfloat16)
    bfv = jnp.concatenate([b1, bs], axis=0).reshape(-1, 1).astype(jnp.float32)
    w2m = jnp.transpose(w2, (0, 1, 3, 2)).reshape(9, C2, C1).astype(jnp.bfloat16)
    w3m = jnp.transpose(w3, (0, 1, 3, 2)).reshape(9, C3, C2).astype(jnp.bfloat16)
    b2m = b2.reshape(-1, 1).astype(jnp.float32)
    b3m = b3.reshape(-1, 1).astype(jnp.float32)

    tap_offsets = tuple((ky - 1) * Wp + (kx - 1) for ky in range(3) for kx in range(3))
    kernel = functools.partial(_resblk_kernel, tap_offsets=tap_offsets,
                               margin=margin, c1=C1)

    def full(a):
        nd = a.ndim
        return pl.BlockSpec(a.shape, lambda b: (0,) * nd)       # resident across steps

    flops = 2 * B * Npad * (Cin * (C1 + C3) + 9 * C1 * C2 + 9 * C2 * C3)
    bytes_accessed = (int(xp.size) * 2 + int(mask.size) * 4 + (B // G) * C3 * n * 2
                      + 2 * (int(wf.size) + int(w2m.size) + int(w3m.size))
                      + 4 * (int(bfv.size) + int(b2m.size) + int(b3m.size)))

    out = pl.pallas_call(
        kernel,
        out_shape=jax.ShapeDtypeStruct((B // G, C3, n), jnp.bfloat16),
        grid_spec=pltpu.PrefetchScalarGridSpec(
            num_scalar_prefetch=0,
            grid=(B // G,),                      # parallel batch-group axis
            in_specs=[
                pl.BlockSpec((1, Cin, n), lambda b: (b, 0, 0)),
                full(mask),
                full(wf), full(bfv),
                full(w2m), full(b2m),
                full(w3m), full(b3m),
            ],
            out_specs=pl.BlockSpec((1, C3, n), lambda b: (b, 0, 0)),
            scratch_shapes=[
                pltpu.VMEM((C1, n + 2 * margin), jnp.bfloat16),   # h1 (+ tap halo)
                pltpu.VMEM((C2, n + 2 * margin), jnp.bfloat16),   # h2 (+ tap halo)
            ],
        ),
        compiler_params=pltpu.CompilerParams(dimension_semantics=("parallel",)),
        cost_estimate=pl.CostEstimate(flops=int(flops), transcendentals=0,
                                      bytes_accessed=int(bytes_accessed)),
    )(xp, mask, wf, bfv, w2m, b2m, w3m, b3m)

    # unpack lanes -> NCHW and drop the lane padding + the conv pad ring
    y = out.reshape(B // G, C3, G, Npad).transpose(0, 2, 1, 3).reshape(B, C3, Npad)
    return y[:, :, :Np].reshape(B, C3, Hp, Wp)[:, :, 1:H + 1, 1:W + 1]


# ------------------------- parameter construction (glue) -------------------------

def _fold_bn(w_hwio, conv_bias, gamma, beta, mean, var, eps=1e-5):
    """Fold eval-mode BatchNorm into conv weight (HWIO) and bias. Exact algebra."""
    scale = gamma / jnp.sqrt(var + eps)
    return w_hwio * scale, (conv_bias - mean) * scale + beta


def make_params(key, chs, kernels):
    """Deterministic synthetic parameters for ResBlk(kernels, chs, upsample=False)."""
    specs = [
        (kernels[0], chs[0], chs[1]),   # net conv1 (1x1)
        (kernels[1], chs[1], chs[2]),   # net conv2 (3x3)
        (kernels[2], chs[2], chs[3]),   # net conv3 (3x3)
        (1,          chs[0], chs[3]),   # shortcut conv (1x1), since chs[0] != chs[-1]
    ]
    params = []
    for k, (ksz, cin, cout) in zip(jax.random.split(key, len(specs)), specs):
        kw, kb, kg, kbe, km, kv = jax.random.split(k, 6)
        w = jax.random.normal(kw, (ksz, ksz, cin, cout), jnp.float32) * 0.2   # HWIO
        cb = jax.random.normal(kb, (cout,), jnp.float32) * 0.1
        gamma = 1.0 + 0.1 * jax.random.normal(kg, (cout,), jnp.float32)
        beta = 0.1 * jax.random.normal(kbe, (cout,), jnp.float32)
        mean = 0.1 * jax.random.normal(km, (cout,), jnp.float32)
        var = jnp.abs(jax.random.normal(kv, (cout,), jnp.float32)) + 0.5
        params.append(_fold_bn(w, cb, gamma, beta, mean, var))
    return params


def _ref_forward(x_nchw, folded_params):
    """Pure-JAX reference with the same folded-BN params and bf16 matmul inputs."""
    (w1, b1), (w2, b2), (w3, b3), (ws, bs) = folded_params

    def conv(x, w_hwio, b, p):
        w_oihw = jnp.transpose(w_hwio, (3, 2, 0, 1)).astype(jnp.bfloat16)
        out = jax.lax.conv_general_dilated(
            x.astype(jnp.bfloat16), w_oihw, window_strides=(1, 1),
            padding=((p, p), (p, p)), dimension_numbers=("NCHW", "OIHW", "NCHW"),
            preferred_element_type=jnp.float32)
        return out + b.reshape(1, -1, 1, 1)

    h = jax.nn.relu(conv(x_nchw, w1, b1, 0))
    h = jax.nn.relu(conv(h, w2, b2, 1))
    h = conv(h, w3, b3, 1)
    return jax.nn.relu(conv(x_nchw, ws, bs, 0) + h)


if __name__ == "__main__":
    kernels = [1, 3, 3]
    chs = [4, 8, 8, 8]          # [ch_in, ch_out1, ch_out2, ch_out3]
    B, H, W = 2, 16, 16

    key = jax.random.PRNGKey(0)
    kx_, kp_ = jax.random.split(key)
    x_nchw = jax.random.normal(kx_, (B, chs[0], H, W), dtype=jnp.float32)

    folded = make_params(kp_, chs, kernels)

    y = jax.block_until_ready(resblk_forward(x_nchw, folded))
    ref = _ref_forward(x_nchw, folded)

    assert y.shape == (B, chs[-1], H, W), f"bad output shape {y.shape}"
    err = float(jnp.max(jnp.abs(y.astype(jnp.float32) - ref)))
    assert jnp.allclose(y.astype(jnp.float32), ref, atol=5e-2, rtol=5e-2), \
        f"max abs err {err}"

    print("KERNEL_OK")
</pallas_src>

<mosaic_0001>
module attributes {stable_mosaic.version = 11 : i64} {
  func.func @_resblk_kernel(%arg0: i32, %arg1: memref<1x4x768xbf16, #tpu.memory_space<vmem>>, %arg2: memref<1x768xf32, #tpu.memory_space<vmem>>, %arg3: memref<16x4xbf16, #tpu.memory_space<vmem>>, %arg4: memref<16x1xf32, #tpu.memory_space<vmem>>, %arg5: memref<9x8x8xbf16, #tpu.memory_space<vmem>>, %arg6: memref<8x1xf32, #tpu.memory_space<vmem>>, %arg7: memref<9x8x8xbf16, #tpu.memory_space<vmem>>, %arg8: memref<8x1xf32, #tpu.memory_space<vmem>>, %arg9: memref<1x8x768xbf16, #tpu.memory_space<vmem>>, %arg10: memref<8x1024xbf16, #tpu.memory_space<vmem>>, %arg11: memref<8x1024xbf16, #tpu.memory_space<vmem>>) attributes {dimension_semantics = [#tpu.dimension_semantics<parallel>], iteration_bounds = array<i64: 1>, scalar_prefetch = 0 : i64, scratch_operands = 2 : i64, tpu.core_type = #tpu.core_type<tc>, window_params = [{transform_indices = @transform_0, window_bounds = array<i64: 1, 4, 768>}, {pipeline_mode = #tpu.pipeline_mode<synchronous>, transform_indices = @transform_1, window_bounds = array<i64: 1, 768>}, {pipeline_mode = #tpu.pipeline_mode<synchronous>, transform_indices = @transform_2, window_bounds = array<i64: 16, 4>}, {pipeline_mode = #tpu.pipeline_mode<synchronous>, transform_indices = @transform_3, window_bounds = array<i64: 16, 1>}, {pipeline_mode = #tpu.pipeline_mode<synchronous>, transform_indices = @transform_4, window_bounds = array<i64: 9, 8, 8>}, {pipeline_mode = #tpu.pipeline_mode<synchronous>, transform_indices = @transform_5, window_bounds = array<i64: 8, 1>}, {pipeline_mode = #tpu.pipeline_mode<synchronous>, transform_indices = @transform_6, window_bounds = array<i64: 9, 8, 8>}, {pipeline_mode = #tpu.pipeline_mode<synchronous>, transform_indices = @transform_7, window_bounds = array<i64: 8, 1>}, {transform_indices = @transform_8, window_bounds = array<i64: 1, 8, 768>}]} {
    %c0 = arith.constant 0 : index
    %c0_0 = arith.constant 0 : index
    %c0_1 = arith.constant 0 : index
    %0 = vector.load %arg1[%c0, %c0_0, %c0_1] : memref<1x4x768xbf16, #tpu.memory_space<vmem>>, vector<1x4x768xbf16>
    %1 = vector.shape_cast %0 : vector<1x4x768xbf16> to vector<4x768xbf16>
    %c0_2 = arith.constant 0 : index
    %c0_3 = arith.constant 0 : index
    %2 = vector.load %arg2[%c0_2, %c0_3] : memref<1x768xf32, #tpu.memory_space<vmem>>, vector<1x768xf32>
    %cst = arith.constant 5.000000e-01 : f32
    %3 = vector.broadcast %cst : f32 to vector<1x768xf32>
    %4 = arith.cmpf ogt, %2, %3 : vector<1x768xf32>
    %c0_4 = arith.constant 0 : index
    %c0_5 = arith.constant 0 : index
    %5 = vector.load %arg3[%c0_4, %c0_5] : memref<16x4xbf16, #tpu.memory_space<vmem>>, vector<16x4xbf16>
    %cst_6 = arith.constant dense<0.000000e+00> : vector<16x768xf32>
    %6 = tpu.matmul %5, %1, %cst_6 {dimension_numbers = #tpu.dot_dimension_numbers<[1], [0], [0], [1], [0, 0, 1, 1], [], []>} : vector<16x4xbf16>, vector<4x768xbf16>, vector<16x768xf32> -> vector<16x768xf32>
    %c0_7 = arith.constant 0 : index
    %c0_8 = arith.constant 0 : index
    %7 = vector.load %arg4[%c0_7, %c0_8] : memref<16x1xf32, #tpu.memory_space<vmem>>, vector<16x1xf32>
    %8 = vector.broadcast %7 : vector<16x1xf32> to vector<16x768xf32>
    %9 = arith.addf %6, %8 : vector<16x768xf32>
    %10 = vector.extract_strided_slice %9 {offsets = [0, 0], sizes = [8, 768], strides = [1, 1]} : vector<16x768xf32> to vector<8x768xf32>
    %cst_9 = arith.constant 0.000000e+00 : f32
    %11 = vector.broadcast %cst_9 : f32 to vector<8x768xf32>
    %12 = arith.maximumf %10, %11 : vector<8x768xf32>
    %cst_10 = arith.constant 0.000000e+00 : f32
    %13 = vector.shape_cast %4 : vector<1x768xi1> to vector<1x768xi1>
    %14 = vector.broadcast %13 : vector<1x768xi1> to vector<8x768xi1>
    %15 = vector.broadcast %cst_10 : f32 to vector<8x768xf32>
    %16 = arith.select %14, %12, %15 : vector<8x768xi1>, vector<8x768xf32>
    %17 = vector.extract_strided_slice %9 {offsets = [8, 0], sizes = [8, 768], strides = [1, 1]} : vector<16x768xf32> to vector<8x768xf32>
    %18 = arith.truncf %16 : vector<8x768xf32> to vector<8x768xbf16>
    %c0_11 = arith.constant 0 : index
    %c128 = arith.constant 128 : index
    %19 = vector.load %arg10[%c0_11, %c128] : memref<8x1024xbf16, #tpu.memory_space<vmem>>, vector<8x768xbf16>
    tpu.vector_store %arg10[%c0_11, %c128], %18 {strides = array<i32>} : memref<8x1024xbf16, #tpu.memory_space<vmem>>, vector<8x768xbf16>,
    %c0_12 = arith.constant 0 : index
    %c109 = arith.constant 109 : index
    %20 = vector.load %arg10[%c0_12, %c109] : memref<8x1024xbf16, #tpu.memory_space<vmem>>, vector<8x768xbf16>
    %c0_13 = arith.constant 0 : index
    %c0_14 = arith.constant 0 : index
    %c0_15 = arith.constant 0 : index
    %21 = vector.load %arg5[%c0_13, %c0_14, %c0_15] : memref<9x8x8xbf16, #tpu.memory_space<vmem>>, vector<1x8x8xbf16>
    %22 = vector.shape_cast %21 : vector<1x8x8xbf16> to vector<8x8xbf16>
    %cst_16 = arith.constant dense<0.000000e+00> : vector<8x768xf32>
    %23 = tpu.matmul %22, %20, %cst_16 {dimension_numbers = #tpu.dot_dimension_numbers<[1], [0], [0], [1], [0, 0, 1, 1], [], []>} : vector<8x8xbf16>, vector<8x768xbf16>, vector<8x768xf32> -> vector<8x768xf32>
    %c0_17 = arith.constant 0 : index
    %c110 = arith.constant 110 : index
    %24 = vector.load %arg10[%c0_17, %c110] : memref<8x1024xbf16, #tpu.memory_space<vmem>>, vector<8x768xbf16>
    %c1 = arith.constant 1 : index
    %c0_18 = arith.constant 0 : index
    %c0_19 = arith.constant 0 : index
    %25 = vector.load %arg5[%c1, %c0_18, %c0_19] : memref<9x8x8xbf16, #tpu.memory_space<vmem>>, vector<1x8x8xbf16>
    %26 = vector.shape_cast %25 : vector<1x8x8xbf16> to vector<8x8xbf16>
    %cst_20 = arith.constant dense<0.000000e+00> : vector<8x768xf32>
    %27 = tpu.matmul %26, %24, %cst_20 {dimension_numbers = #tpu.dot_dimension_numbers<[1], [0], [0], [1], [0, 0, 1, 1], [], []>} : vector<8x8xbf16>, vector<8x768xbf16>, vector<8x768xf32> -> vector<8x768xf32>
    %28 = arith.addf %23, %27 : vector<8x768xf32>
    %c0_21 = arith.constant 0 : index
    %c111 = arith.constant 111 : index
    %29 = vector.load %arg10[%c0_21, %c111] : memref<8x1024xbf16, #tpu.memory_space<vmem>>, vector<8x768xbf16>
    %c2 = arith.constant 2 : index
    %c0_22 = arith.constant 0 : index
    %c0_23 = arith.constant 0 : index
    %30 = vector.load %arg5[%c2, %c0_22, %c0_23] : memref<9x8x8xbf16, #tpu.memory_space<vmem>>, vector<1x8x8xbf16>
    %31 = vector.shape_cast %30 : vector<1x8x8xbf16> to vector<8x8xbf16>
    %cst_24 = arith.constant dense<0.000000e+00> : vector<8x768xf32>
    %32 = tpu.matmul %31, %29, %cst_24 {dimension_numbers = #tpu.dot_dimension_numbers<[1], [0], [0], [1], [0, 0, 1, 1], [], []>} : vector<8x8xbf16>, vector<8x768xbf16>, vector<8x768xf32> -> vector<8x768xf32>
    %33 = arith.addf %28, %32 : vector<8x768xf32>
    %c0_25 = arith.constant 0 : index
    %c127 = arith.constant 127 : index
    %34 = vector.load %arg10[%c0_25, %c127] : memref<8x1024xbf16, #tpu.memory_space<vmem>>, vector<8x768xbf16>
    %c3 = arith.constant 3 : index
    %c0_26 = arith.constant 0 : index
    %c0_27 = arith.constant 0 : index
    %35 = vector.load %arg5[%c3, %c0_26, %c0_27] : memref<9x8x8xbf16, #tpu.memory_space<vmem>>, vector<1x8x8xbf16>
    %36 = vector.shape_cast %35 : vector<1x8x8xbf16> to vector<8x8xbf16>
    %cst_28 = arith.constant dense<0.000000e+00> : vector<8x768xf32>
    %37 = tpu.matmul %36, %34, %cst_28 {dimension_numbers = #tpu.dot_dimension_numbers<[1], [0], [0], [1], [0, 0, 1, 1], [], []>} : vector<8x8xbf16>, vector<8x768xbf16>, vector<8x768xf32> -> vector<8x768xf32>
    %38 = arith.addf %33, %37 : vector<8x768xf32>
    %c0_29 = arith.constant 0 : index
    %c128_30 = arith.constant 128 : index
    %39 = vector.load %arg10[%c0_29, %c128_30] : memref<8x1024xbf16, #tpu.memory_space<vmem>>, vector<8x768xbf16>
    %c4 = arith.constant 4 : index
    %c0_31 = arith.constant 0 : index
    %c0_32 = arith.constant 0 : index
    %40 = vector.load %arg5[%c4, %c0_31, %c0_32] : memref<9x8x8xbf16, #tpu.memory_space<vmem>>, vector<1x8x8xbf16>
    %41 = vector.shape_cast %40 : vector<1x8x8xbf16> to vector<8x8xbf16>
    %cst_33 = arith.constant dense<0.000000e+00> : vector<8x768xf32>
    %42 = tpu.matmul %41, %39, %cst_33 {dimension_numbers = #tpu.dot_dimension_numbers<[1], [0], [0], [1], [0, 0, 1, 1], [], []>} : vector<8x8xbf16>, vector<8x768xbf16>, vector<8x768xf32> -> vector<8x768xf32>
    %43 = arith.addf %38, %42 : vector<8x768xf32>
    %c0_34 = arith.constant 0 : index
    %c129 = arith.constant 129 : index
    %44 = vector.load %arg10[%c0_34, %c129] : memref<8x1024xbf16, #tpu.memory_space<vmem>>, vector<8x768xbf16>
    %c5 = arith.constant 5 : index
    %c0_35 = arith.constant 0 : index
    %c0_36 = arith.constant 0 : index
    %45 = vector.load %arg5[%c5, %c0_35, %c0_36] : memref<9x8x8xbf16, #tpu.memory_space<vmem>>, vector<1x8x8xbf16>
    %46 = vector.shape_cast %45 : vector<1x8x8xbf16> to vector<8x8xbf16>
    %cst_37 = arith.constant dense<0.000000e+00> : vector<8x768xf32>
    %47 = tpu.matmul %46, %44, %cst_37 {dimension_numbers = #tpu.dot_dimension_numbers<[1], [0], [0], [1], [0, 0, 1, 1], [], []>} : vector<8x8xbf16>, vector<8x768xbf16>, vector<8x768xf32> -> vector<8x768xf32>
    %48 = arith.addf %43, %47 : vector<8x768xf32>
    %c0_38 = arith.constant 0 : index
    %c145 = arith.constant 145 : index
    %49 = vector.load %arg10[%c0_38, %c145] : memref<8x1024xbf16, #tpu.memory_space<vmem>>, vector<8x768xbf16>
    %c6 = arith.constant 6 : index
    %c0_39 = arith.constant 0 : index
    %c0_40 = arith.constant 0 : index
    %50 = vector.load %arg5[%c6, %c0_39, %c0_40] : memref<9x8x8xbf16, #tpu.memory_space<vmem>>, vector<1x8x8xbf16>
    %51 = vector.shape_cast %50 : vector<1x8x8xbf16> to vector<8x8xbf16>
    %cst_41 = arith.constant dense<0.000000e+00> : vector<8x768xf32>
    %52 = tpu.matmul %51, %49, %cst_41 {dimension_numbers = #tpu.dot_dimension_numbers<[1], [0], [0], [1], [0, 0, 1, 1], [], []>} : vector<8x8xbf16>, vector<8x768xbf16>, vector<8x768xf32> -> vector<8x768xf32>
    %53 = arith.addf %48, %52 : vector<8x768xf32>
    %c0_42 = arith.constant 0 : index
    %c146 = arith.constant 146 : index
    %54 = vector.load %arg10[%c0_42, %c146] : memref<8x1024xbf16, #tpu.memory_space<vmem>>, vector<8x768xbf16>
    %c7 = arith.constant 7 : index
    %c0_43 = arith.constant 0 : index
    %c0_44 = arith.constant 0 : index
    %55 = vector.load %arg5[%c7, %c0_43, %c0_44] : memref<9x8x8xbf16, #tpu.memory_space<vmem>>, vector<1x8x8xbf16>
    %56 = vector.shape_cast %55 : vector<1x8x8xbf16> to vector<8x8xbf16>
    %cst_45 = arith.constant dense<0.000000e+00> : vector<8x768xf32>
    %57 = tpu.matmul %56, %54, %cst_45 {dimension_numbers = #tpu.dot_dimension_numbers<[1], [0], [0], [1], [0, 0, 1, 1], [], []>} : vector<8x8xbf16>, vector<8x768xbf16>, vector<8x768xf32> -> vector<8x768xf32>
    %58 = arith.addf %53, %57 : vector<8x768xf32>
    %c0_46 = arith.constant 0 : index
    %c147 = arith.constant 147 : index
    %59 = vector.load %arg10[%c0_46, %c147] : memref<8x1024xbf16, #tpu.memory_space<vmem>>, vector<8x768xbf16>
    %c8 = arith.constant 8 : index
    %c0_47 = arith.constant 0 : index
    %c0_48 = arith.constant 0 : index
    %60 = vector.load %arg5[%c8, %c0_47, %c0_48] : memref<9x8x8xbf16, #tpu.memory_space<vmem>>, vector<1x8x8xbf16>
    %61 = vector.shape_cast %60 : vector<1x8x8xbf16> to vector<8x8xbf16>
    %cst_49 = arith.constant dense<0.000000e+00> : vector<8x768xf32>
    %62 = tpu.matmul %61, %59, %cst_49 {dimension_numbers = #tpu.dot_dimension_numbers<[1], [0], [0], [1], [0, 0, 1, 1], [], []>} : vector<8x8xbf16>, vector<8x768xbf16>, vector<8x768xf32> -> vector<8x768xf32>
    %63 = arith.addf %58, %62 : vector<8x768xf32>
    %c0_50 = arith.constant 0 : index
    %c0_51 = arith.constant 0 : index
    %64 = vector.load %arg6[%c0_50, %c0_51] : memref<8x1xf32, #tpu.memory_space<vmem>>, vector<8x1xf32>
    %65 = vector.broadcast %64 : vector<8x1xf32> to vector<8x768xf32>
    %66 = arith.addf %63, %65 : vector<8x768xf32>
    %cst_52 = arith.constant 0.000000e+00 : f32
    %67 = vector.broadcast %cst_52 : f32 to vector<8x768xf32>
    %68 = arith.maximumf %66, %67 : vector<8x768xf32>
    %cst_53 = arith.constant 0.000000e+00 : f32
    %69 = vector.shape_cast %4 : vector<1x768xi1> to vector<1x768xi1>
    %70 = vector.broadcast %69 : vector<1x768xi1> to vector<8x768xi1>
    %71 = vector.broadcast %cst_53 : f32 to vector<8x768xf32>
    %72 = arith.select %70, %68, %71 : vector<8x768xi1>, vector<8x768xf32>
    %73 = arith.truncf %72 : vector<8x768xf32> to vector<8x768xbf16>
    %c0_54 = arith.constant 0 : index
    %c128_55 = arith.constant 128 : index
    %74 = vector.load %arg11[%c0_54, %c128_55] : memref<8x1024xbf16, #tpu.memory_space<vmem>>, vector<8x768xbf16>
    tpu.vector_store %arg11[%c0_54, %c128_55], %73 {strides = array<i32>} : memref<8x1024xbf16, #tpu.memory_space<vmem>>, vector<8x768xbf16>,
    %c0_56 = arith.constant 0 : index
    %c109_57 = arith.constant 109 : index
    %75 = vector.load %arg11[%c0_56, %c109_57] : memref<8x1024xbf16, #tpu.memory_space<vmem>>, vector<8x768xbf16>
    %c0_58 = arith.constant 0 : index
    %c0_59 = arith.constant 0 : index
    %c0_60 = arith.constant 0 : index
    %76 = vector.load %arg7[%c0_58, %c0_59, %c0_60] : memref<9x8x8xbf16, #tpu.memory_space<vmem>>, vector<1x8x8xbf16>
    %77 = vector.shape_cast %76 : vector<1x8x8xbf16> to vector<8x8xbf16>
    %cst_61 = arith.constant dense<0.000000e+00> : vector<8x768xf32>
    %78 = tpu.matmul %77, %75, %cst_61 {dimension_numbers = #tpu.dot_dimension_numbers<[1], [0], [0], [1], [0, 0, 1, 1], [], []>} : vector<8x8xbf16>, vector<8x768xbf16>, vector<8x768xf32> -> vector<8x768xf32>
    %c0_62 = arith.constant 0 : index
    %c110_63 = arith.constant 110 : index
    %79 = vector.load %arg11[%c0_62, %c110_63] : memref<8x1024xbf16, #tpu.memory_space<vmem>>, vector<8x768xbf16>
    %c1_64 = arith.constant 1 : index
    %c0_65 = arith.constant 0 : index
    %c0_66 = arith.constant 0 : index
    %80 = vector.load %arg7[%c1_64, %c0_65, %c0_66] : memref<9x8x8xbf16, #tpu.memory_space<vmem>>, vector<1x8x8xbf16>
    %81 = vector.shape_cast %80 : vector<1x8x8xbf16> to vector<8x8xbf16>
    %cst_67 = arith.constant dense<0.000000e+00> : vector<8x768xf32>
    %82 = tpu.matmul %81, %79, %cst_67 {dimension_numbers = #tpu.dot_dimension_numbers<[1], [0], [0], [1], [0, 0, 1, 1], [], []>} : vector<8x8xbf16>, vector<8x768xbf16>, vector<8x768xf32> -> vector<8x768xf32>
    %83 = arith.addf %78, %82 : vector<8x768xf32>
    %c0_68 = arith.constant 0 : index
    %c111_69 = arith.constant 111 : index
    %84 = vector.load %arg11[%c0_68, %c111_69] : memref<8x1024xbf16, #tpu.memory_space<vmem>>, vector<8x768xbf16>
    %c2_70 = arith.constant 2 : index
    %c0_71 = arith.constant 0 : index
    %c0_72 = arith.constant 0 : index
    %85 = vector.load %arg7[%c2_70, %c0_71, %c0_72] : memref<9x8x8xbf16, #tpu.memory_space<vmem>>, vector<1x8x8xbf16>
    %86 = vector.shape_cast %85 : vector<1x8x8xbf16> to vector<8x8xbf16>
    %cst_73 = arith.constant dense<0.000000e+00> : vector<8x768xf32>
    %87 = tpu.matmul %86, %84, %cst_73 {dimension_numbers = #tpu.dot_dimension_numbers<[1], [0], [0], [1], [0, 0, 1, 1], [], []>} : vector<8x8xbf16>, vector<8x768xbf16>, vector<8x768xf32> -> vector<8x768xf32>
    %88 = arith.addf %83, %87 : vector<8x768xf32>
    %c0_74 = arith.constant 0 : index
    %c127_75 = arith.constant 127 : index
    %89 = vector.load %arg11[%c0_74, %c127_75] : memref<8x1024xbf16, #tpu.memory_space<vmem>>, vector<8x768xbf16>
    %c3_76 = arith.constant 3 : index
    %c0_77 = arith.constant 0 : index
    %c0_78 = arith.constant 0 : index
    %90 = vector.load %arg7[%c3_76, %c0_77, %c0_78] : memref<9x8x8xbf16, #tpu.memory_space<vmem>>, vector<1x8x8xbf16>
    %91 = vector.shape_cast %90 : vector<1x8x8xbf16> to vector<8x8xbf16>
    %cst_79 = arith.constant dense<0.000000e+00> : vector<8x768xf32>
    %92 = tpu.matmul %91, %89, %cst_79 {dimension_numbers = #tpu.dot_dimension_numbers<[1], [0], [0], [1], [0, 0, 1, 1], [], []>} : vector<8x8xbf16>, vector<8x768xbf16>, vector<8x768xf32> -> vector<8x768xf32>
    %93 = arith.addf %88, %92 : vector<8x768xf32>
    %c0_80 = arith.constant 0 : index
    %c128_81 = arith.constant 128 : index
    %94 = vector.load %arg11[%c0_80, %c128_81] : memref<8x1024xbf16, #tpu.memory_space<vmem>>, vector<8x768xbf16>
    %c4_82 = arith.constant 4 : index
    %c0_83 = arith.constant 0 : index
    %c0_84 = arith.constant 0 : index
    %95 = vector.load %arg7[%c4_82, %c0_83, %c0_84] : memref<9x8x8xbf16, #tpu.memory_space<vmem>>, vector<1x8x8xbf16>
    %96 = vector.shape_cast %95 : vector<1x8x8xbf16> to vector<8x8xbf16>
    %cst_85 = arith.constant dense<0.000000e+00> : vector<8x768xf32>
    %97 = tpu.matmul %96, %94, %cst_85 {dimension_numbers = #tpu.dot_dimension_numbers<[1], [0], [0], [1], [0, 0, 1, 1], [], []>} : vector<8x8xbf16>, vector<8x768xbf16>, vector<8x768xf32> -> vector<8x768xf32>
    %98 = arith.addf %93, %97 : vector<8x768xf32>
    %c0_86 = arith.constant 0 : index
    %c129_87 = arith.constant 129 : index
    %99 = vector.load %arg11[%c0_86, %c129_87] : memref<8x1024xbf16, #tpu.memory_space<vmem>>, vector<8x768xbf16>
    %c5_88 = arith.constant 5 : index
    %c0_89 = arith.constant 0 : index
    %c0_90 = arith.constant 0 : index
    %100 = vector.load %arg7[%c5_88, %c0_89, %c0_90] : memref<9x8x8xbf16, #tpu.memory_space<vmem>>, vector<1x8x8xbf16>
    %101 = vector.shape_cast %100 : vector<1x8x8xbf16> to vector<8x8xbf16>
    %cst_91 = arith.constant dense<0.000000e+00> : vector<8x768xf32>
    %102 = tpu.matmul %101, %99, %cst_91 {dimension_numbers = #tpu.dot_dimension_numbers<[1], [0], [0], [1], [0, 0, 1, 1], [], []>} : vector<8x8xbf16>, vector<8x768xbf16>, vector<8x768xf32> -> vector<8x768xf32>
    %103 = arith.addf %98, %102 : vector<8x768xf32>
    %c0_92 = arith.constant 0 : index
    %c145_93 = arith.constant 145 : index
    %104 = vector.load %arg11[%c0_92, %c145_93] : memref<8x1024xbf16, #tpu.memory_space<vmem>>, vector<8x768xbf16>
    %c6_94 = arith.constant 6 : index
    %c0_95 = arith.constant 0 : index
    %c0_96 = arith.constant 0 : index
    %105 = vector.load %arg7[%c6_94, %c0_95, %c0_96] : memref<9x8x8xbf16, #tpu.memory_space<vmem>>, vector<1x8x8xbf16>
    %106 = vector.shape_cast %105 : vector<1x8x8xbf16> to vector<8x8xbf16>
    %cst_97 = arith.constant dense<0.000000e+00> : vector<8x768xf32>
    %107 = tpu.matmul %106, %104, %cst_97 {dimension_numbers = #tpu.dot_dimension_numbers<[1], [0], [0], [1], [0, 0, 1, 1], [], []>} : vector<8x8xbf16>, vector<8x768xbf16>, vector<8x768xf32> -> vector<8x768xf32>
    %108 = arith.addf %103, %107 : vector<8x768xf32>
    %c0_98 = arith.constant 0 : index
    %c146_99 = arith.constant 146 : index
    %109 = vector.load %arg11[%c0_98, %c146_99] : memref<8x1024xbf16, #tpu.memory_space<vmem>>, vector<8x768xbf16>
    %c7_100 = arith.constant 7 : index
    %c0_101 = arith.constant 0 : index
    %c0_102 = arith.constant 0 : index
    %110 = vector.load %arg7[%c7_100, %c0_101, %c0_102] : memref<9x8x8xbf16, #tpu.memory_space<vmem>>, vector<1x8x8xbf16>
    %111 = vector.shape_cast %110 : vector<1x8x8xbf16> to vector<8x8xbf16>
    %cst_103 = arith.constant dense<0.000000e+00> : vector<8x768xf32>
    %112 = tpu.matmul %111, %109, %cst_103 {dimension_numbers = #tpu.dot_dimension_numbers<[1], [0], [0], [1], [0, 0, 1, 1], [], []>} : vector<8x8xbf16>, vector<8x768xbf16>, vector<8x768xf32> -> vector<8x768xf32>
    %113 = arith.addf %108, %112 : vector<8x768xf32>
    %c0_104 = arith.constant 0 : index
    %c147_105 = arith.constant 147 : index
    %114 = vector.load %arg11[%c0_104, %c147_105] : memref<8x1024xbf16, #tpu.memory_space<vmem>>, vector<8x768xbf16>
    %c8_106 = arith.constant 8 : index
    %c0_107 = arith.constant 0 : index
    %c0_108 = arith.constant 0 : index
    %115 = vector.load %arg7[%c8_106, %c0_107, %c0_108] : memref<9x8x8xbf16, #tpu.memory_space<vmem>>, vector<1x8x8xbf16>
    %116 = vector.shape_cast %115 : vector<1x8x8xbf16> to vector<8x8xbf16>
    %cst_109 = arith.constant dense<0.000000e+00> : vector<8x768xf32>
    %117 = tpu.matmul %116, %114, %cst_109 {dimension_numbers = #tpu.dot_dimension_numbers<[1], [0], [0], [1], [0, 0, 1, 1], [], []>} : vector<8x8xbf16>, vector<8x768xbf16>, vector<8x768xf32> -> vector<8x768xf32>
    %118 = arith.addf %113, %117 : vector<8x768xf32>
    %c0_110 = arith.constant 0 : index
    %c0_111 = arith.constant 0 : index
    %119 = vector.load %arg8[%c0_110, %c0_111] : memref<8x1xf32, #tpu.memory_space<vmem>>, vector<8x1xf32>
    %120 = vector.broadcast %119 : vector<8x1xf32> to vector<8x768xf32>
    %121 = arith.addf %118, %120 : vector<8x768xf32>
    %122 = arith.addf %17, %121 : vector<8x768xf32>
    %cst_112 = arith.constant 0.000000e+00 : f32
    %123 = vector.broadcast %cst_112 : f32 to vector<8x768xf32>
    %124 = arith.maximumf %122, %123 : vector<8x768xf32>
    %125 = arith.truncf %124 : vector<8x768xf32> to vector<8x768xbf16>
    %c0_113 = arith.constant 0 : index
    %c0_114 = arith.constant 0 : index
    %c0_115 = arith.constant 0 : index
    %126 = vector.load %arg9[%c0_113, %c0_114, %c0_115] : memref<1x8x768xbf16, #tpu.memory_space<vmem>>, vector<1x8x768xbf16>
    %127 = vector.shape_cast %126 : vector<1x8x768xbf16> to vector<8x768xbf16>
    %128 = vector.shape_cast %125 : vector<8x768xbf16> to vector<1x8x768xbf16>
    tpu.vector_store %arg9[%c0_113, %c0_114, %c0_115], %128 {strides = array<i32>} : memref<1x8x768xbf16, #tpu.memory_space<vmem>>, vector<1x8x768xbf16>,
    return
  }
  func.func @transform_0(%arg0: i32) -> (i32, i32, i32) {
    %c0_i32 = arith.constant 0 : i32
    %c0_i32_0 = arith.constant 0 : i32
    %c0_i32_1 = arith.constant 0 : i32
    return %arg0, %c0_i32, %c0_i32_0 : i32, i32, i32
  }
  func.func @transform_1(%arg0: i32) -> (i32, i32) {
    %c0_i32 = arith.constant 0 : i32
    %c0_i32_0 = arith.constant 0 : i32
    %c0_i32_1 = arith.constant 0 : i32
    return %c0_i32, %c0_i32_0 : i32, i32
  }
  func.func @transform_2(%arg0: i32) -> (i32, i32) {
    %c0_i32 = arith.constant 0 : i32
    %c0_i32_0 = arith.constant 0 : i32
    %c0_i32_1 = arith.constant 0 : i32
    return %c0_i32, %c0_i32_0 : i32, i32
  }
  func.func @transform_3(%arg0: i32) -> (i32, i32) {
    %c0_i32 = arith.constant 0 : i32
    %c0_i32_0 = arith.constant 0 : i32
    %c0_i32_1 = arith.constant 0 : i32
    return %c0_i32, %c0_i32_0 : i32, i32
  }
  func.func @transform_4(%arg0: i32) -> (i32, i32, i32) {
    %c0_i32 = arith.constant 0 : i32
    %c0_i32_0 = arith.constant 0 : i32
    %c0_i32_1 = arith.constant 0 : i32
    %c0_i32_2 = arith.constant 0 : i32
    return %c0_i32, %c0_i32_0, %c0_i32_1 : i32, i32, i32
  }
  func.func @transform_5(%arg0: i32) -> (i32, i32) {
    %c0_i32 = arith.constant 0 : i32
    %c0_i32_0 = arith.constant 0 : i32
    %c0_i32_1 = arith.constant 0 : i32
    return %c0_i32, %c0_i32_0 : i32, i32
  }
  func.func @transform_6(%arg0: i32) -> (i32, i32, i32) {
    %c0_i32 = arith.constant 0 : i32
    %c0_i32_0 = arith.constant 0 : i32
    %c0_i32_1 = arith.constant 0 : i32
    %c0_i32_2 = arith.constant 0 : i32
    return %c0_i32, %c0_i32_0, %c0_i32_1 : i32, i32, i32
  }
  func.func @transform_7(%arg0: i32) -> (i32, i32) {
    %c0_i32 = arith.constant 0 : i32
    %c0_i32_0 = arith.constant 0 : i32
    %c0_i32_1 = arith.constant 0 : i32
    return %c0_i32, %c0_i32_0 : i32, i32
  }
  func.func @transform_8(%arg0: i32) -> (i32, i32, i32) {
    %c0_i32 = arith.constant 0 : i32
    %c0_i32_0 = arith.constant 0 : i32
    %c0_i32_1 = arith.constant 0 : i32
    return %arg0, %c0_i32, %c0_i32_0 : i32, i32, i32
  }
}

</mosaic_0001>

<bundles_post_ra>
// kernel: tpu_custom_call.1
= control target key start
LH: loop header
LB: loop body
LE: loop exit
PB: predicated region body
PF: predicated region fallthrough
CT: control target
= control target key end

     0   :  { %v2800_v2 = vmov 0   ;;  %s3566_s0 = inlined_call_operand.vmem [shape: bf16[1,4,768], index: 0, kind: input, shape index: {}]   ;;  %s3567_s1 = inlined_call_operand.vmem [shape: f32[1,768], index: 1, kind: input, shape index: {}]   ;;  %s3568_s2 = inlined_call_operand.vmem [shape: bf16[16,4], index: 2, kind: input, shape index: {}]   ;;  %s3569_s3 = inlined_call_operand.vmem [shape: f32[16,1], index: 3, kind: input, shape index: {}]   ;;  %s3570_s4 = inlined_call_operand.vmem [shape: bf16[9,8,8], index: 4, kind: input, shape index: {}]   ;;  %s3571_s5 = inlined_call_operand.vmem [shape: f32[8,1], index: 5, kind: input, shape index: {}]   ;;  %s3572_s6 = inlined_call_operand.vmem [shape: bf16[9,8,8], index: 6, kind: input, shape index: {}]   ;;  %s3573_s7 = inlined_call_operand.vmem [shape: f32[8,1], index: 7, kind: input, shape index: {}]   ;;  %s3574_s8 = inlined_call_operand.hbm [shape: bf16[1,8,768], index: 8, kind: output, shape index: {}]  }
   0x1   :  { %v31_v0 = vld [vmem:[%s3566_s0] sm:$0xff]  ;;  %2772 = vset.pattern.permute.xlu0 %v2800_v2  ;;  %v32_v3 = vld [vmem:[%s3566_s0 + $0x8] sm:$0xf]  ;;  %2773 = vset.pattern.permute.xlu1 %v2800_v2 }
   0x2   :  { %v37_v1 = vld [vmem:[%s3569_s3] sm:$0xff]  ;;  %55 = vst [vmem:[#allocation1] ss:$4 sm:$0xff] %v31_v0 }
   0x3   :  { %41 = vperm.xlu0 %2772, %v37_v1   ;;  %58 = vst [vmem:[#allocation1 + $0x20] ss:$4 sm:$0xff] %v32_v3 }
   0x4   :  { %13 = vsyncpa [#allocation5], 0  ;;  %vm69_vm0 = vcmask 1041408   ;;  %v2761_v9 = vld [vmem:[%s3568_s2] sm:$0xff]  ;;  %vm65_vm1 = vcmask 31744   ;;  %s2802_s13 = smov 19  }
   0x5   :  { %v33_v17 = vld [vmem:[%s3567_s1] sm:$0x3f]  ;;  %s2801_s1 = smov 18   ;;  %s2803_s14 = smov 17   ;;  %vm236_vm9 = vcmask 146432   ;;  %vm247_vm10 = vcmask 1043456  }
   0x6   :  { %vm34_vm2 = vcmp.gt.f32.partialorder %v33_v17, 0.5  ;;  %s2804_s15 = smov 1   ;;  %s2805_s16 = smov 127   ;;  %vm243_vm11 = vcmask 64512   ;;  %vm358_vm12 = vcmask 154624   ;;  %vm480_vm13 = vcmask 138240  }
   0x7   :  { %v172_v18 = vsel %vm34_vm2, 1, %v2800_v2  ;;  %s2806_s17 = smov 111   ;;  %s2807_s18 = smov 110   ;;  %vm608_vm14 = vcmask 7168   ;;  %vm883_vm15 = vcmask 1039360   ;;  %vm1267_vm2 = vcmask 891904  }
   0x8   :  { %v173_v20 = vperm.slane %v172_v18, 0  ;;  %v174_v21 = vperm.slane %v172_v18, 1  ;;  %v175_v32 = vperm.slane %v172_v18, 2  ;;  %v176_v34 = vperm.slane %v172_v18, 3  ;;  %s2808_s21 = smov 109   ;;  %s2618_s0 = sshll.u32 %s3574_s8, 4  ;;  %s2619_s0 = int_to_ptr.hbm [resolvable:$true] %s2618_s0 }
   0x9   :  { %v59_v4 = vld.sshfl [vmem:[#allocation1] sm:$0xff pattern:$0x73625140]  ;;  %v60_v5 = vld.sshfl [vmem:[#allocation1 + $0x8] sm:$0xff pattern:$0x73625140] }
   0xa   :  { %v70_v6 = vsel %vm69_vm0, %v59_v4, 0  ;;  %v72_v7 = vsel %vm69_vm0, %v60_v5, 0  ;;  %v61_v8 = vld.sshfl [vmem:[#allocation1 + $0x10] sm:$0xff pattern:$0x73625140]  ;;  %vm2876_vm3 = vcmp.eq.s32.totalorder %v173_v20, 1 }
   0xb   :  { %89 = vmatpush.bf16.msra.mxu0 %v70_v6  ;;  %103 = vmatpush.bf16.msra.mxu1 %v72_v7  ;;  %v74_v10 = vsel %vm69_vm0, %v61_v8, 0  ;;  %v62_v11 = vld.sshfl [vmem:[#allocation1 + $0x18] sm:$0xff pattern:$0x73625140]  ;;  %vm2880_vm4 = vcmp.eq.s32.totalorder %v174_v21, 1  ;;  %vm2893_vm5 = vcmp.eq.s32.totalorder %v175_v32, 1 }
   0xc   :  { %117 = vmatpush.bf16.msra.mxu2 %v74_v10  ;;  %v76_v12 = vsel %vm69_vm0, %v62_v11, 0  ;;  %v63_v13 = vld.sshfl [vmem:[#allocation1 + $0x20] sm:$0xff pattern:$0x73625140]  ;;  %vm2899_vm6 = vcmp.eq.s32.totalorder %v176_v34, 1  ;;  %v177_v48 = vperm.slane %v172_v18, 4 }
   0xd   :  { %131 = vmatpush.bf16.msra.mxu3 %v76_v12  ;;  %v78_v14 = vsel %vm69_vm0, %v63_v13, 0  ;;  %v64_v15 = vld.sshfl [vmem:[#allocation1 + $0x28] sm:$0xff pattern:$0x73625140]  ;;  %v178_v49 = vperm.slane %v172_v18, 5 }
   0xe   :  { %2631 = vmatmul.msk.bf16.vlgmr.msra.gmra.mxu0 %vm65_vm1, %v2761_v9  ;;  %2632 = vmatmul.msk.bf16.vlgmr.msra.gmra.mxu1 %vm65_vm1, %v2761_v9  ;;  %v80_v16 = vsel %vm69_vm0, %v64_v15, 0  ;;  %vm2910_vm7 = vcmp.eq.s32.totalorder %v177_v48, 1  ;;  %vm1011_vm0 = vcmask 908288  }
   0xf   :  { %2633 = vmatmul.msk.bf16.vlgmr.msra.gmra.mxu2 %vm65_vm1, %v2761_v9  ;;  %145 = vmatpush.bf16.msrb.mxu0 %v78_v14  ;;  %vm2914_vm8 = vcmp.eq.s32.totalorder %v178_v49, 1 }
  0x10   :  { %2634 = vmatmul.msk.bf16.vlgmr.msra.gmra.mxu3 %vm65_vm1, %v2761_v9  ;;  %159 = vmatpush.bf16.msrb.mxu1 %v80_v16 }
  0x1e   :  { %2635 = vmatmul.msk.bf16.vlgmr.msrb.gmra.mxu0 %vm65_vm1, %v2761_v9  ;;  %2636 = vmatmul.msk.bf16.vlgmr.msrb.gmra.mxu1 %vm65_vm1, %v2761_v9  ;;  %vm1139_vm1 = vcmask 900096  }
  0x75   :  { %v42_v19 = vpop.permute.xlu0 %41 }
  0x8b   :  { %v91_v22 = vpop.f32.mrf.mxu0  ;;  %v105_v23 = vpop.f32.mrf.mxu1 }
  0x8c   :  { %v92_v24 = vadd.f32 %v91_v22, %v42_v19  ;;  %v106_v25 = vadd.f32 %v105_v23, %v42_v19 }
  0x8e   :  { %v166_v28 = vmax.f32 %v92_v24, 0.0  ;;  %v167_v29 = vmax.f32 %v106_v25, 0.0 }
  0x90   :  { %v185_v30 = vsel %vm2876_vm3, %v166_v28, 0.0  ;;  %v186_v31 = vsel %vm2880_vm4, %v167_v29, 0.0 }
  0x91   :  { %v2888_v33 = vpack.c.bf16 %v186_v31, %v185_v30 }
  0x92   :  { %v119_v35 = vpop.f32.mrf.mxu2 }
  0x93   :  { %194 = vst [vmem:[#allocation2 + $0x4] sm:$0xff] %v2888_v33  ;;  %v120_v36 = vadd.f32 %v119_v35, %v42_v19  ;;  %v133_v37 = vpop.f32.mrf.mxu3  ;;  %v2891_v38 = vpop.f32.mrf.mxu0  ;;  %v855_v16 = vunpack.c.l.b16 %v2888_v33  ;;  %v856_v17 = vunpack.c.h.b16 %v2888_v33  ;;  %v2637_v35 = vld [vmem:[%s3570_s4 + $0x4] sm:$0xf] }
  0x94   :  { %v134_v40 = vadd.f32 %v133_v37, %v42_v19  ;;  %v2897_v41 = vpop.f32.mrf.mxu1 }
  0x95   :  { %v168_v42 = vmax.f32 %v120_v36, 0.0  ;;  %v2957_v20 = vpack.c.b16 %v856_v17, %v856_v17 }
  0x96   :  { %v169_v44 = vmax.f32 %v134_v40, 0.0 }
  0x97   :  { %v187_v45 = vsel %vm2893_vm5, %v168_v42, 0.0 }
  0x98   :  { %v188_v46 = vsel %vm2899_vm6, %v169_v44, 0.0 }
  0x99   :  { %v2907_v47 = vpack.c.bf16 %v188_v46, %v187_v45 }
  0x9a   :  { %v197_v50 = vld [vmem:[#allocation2] sm:$0xff] }
  0x9b   :  { %195 = vst [vmem:[#allocation2 + $0xc] sm:$0xff] %v2907_v47  ;;  %v147_v51 = vpop.f32.mrf.mxu0  ;;  %v209_v52 = vunpack.c.h.b16 %v197_v50  ;;  %v208_v53 = vunpack.c.l.b16 %v197_v50  ;;  %v857_v15 = vunpack.c.l.b16 %v2907_v47  ;;  %v858_v22 = vunpack.c.h.b16 %v2907_v47 }
  0x9c   :  { %v148_v54 = vadd.f32 %v147_v51, %v42_v19  ;;  %v161_v55 = vpop.f32.mrf.mxu1 }
  0x9d   :  { %v162_v57 = vadd.f32 %v161_v55, %v42_v19  ;;  %v216_v58 = vpack.c.b16 %v209_v52, %v209_v52  ;;  %v215_v59 = vpack.c.b16 %v208_v53, %v208_v53  ;;  %v2953_v18 = vpack.c.b16 %v857_v15, %v857_v15 }
  0x9e   :  { %v170_v60 = vmax.f32 %v148_v54, 0.0  ;;  %v2955_v19 = vpack.c.b16 %v855_v16, %v855_v16  ;;  %v2968_v25 = vpack.c.b16 %v858_v22, %v858_v22 }
  0x9f   :  { %v171_v62 = vmax.f32 %v162_v57, 0.0  ;;  %224 = vrot.lane.b32.xlu1 %v216_v58, %s2801_s1  ;;  %222 = vrot.lane.b32.xlu0 %v215_v59, %s2801_s1 }
  0xa0   :  { %v189_v63 = vsel %vm2910_vm7, %v170_v60, 0.0 }
  0xa1   :  { %v190_v0 = vsel %vm2914_vm8, %v171_v62, 0.0 }
  0xa2   :  { %v193_v1 = vpack.c.bf16 %v190_v0, %v189_v63  ;;  %v198_v2 = vld [vmem:[#allocation2 + $0x8] sm:$0xff] }
  0xa3   :  { %v211_v3 = vunpack.c.h.b16 %v198_v2  ;;  %v210_v4 = vunpack.c.l.b16 %v198_v2 }
  0xa4   :  { %196 = vst [vmem:[#allocation2 + $0x14] sm:$0xff] %v193_v1  ;;  %v860_v21 = vunpack.c.h.b16 %v193_v1  ;;  %v859_v23 = vunpack.c.l.b16 %v193_v1 }
  0xa5   :  { %v218_v5 = vpack.c.b16 %v211_v3, %v211_v3  ;;  %v217_v6 = vpack.c.b16 %v210_v4, %v210_v4  ;;  %v201_v4 = vld [vmem:[%s3570_s4] sm:$0xf] }
  0xa6   :  { %v2966_v24 = vpack.c.b16 %v860_v21, %v860_v21  ;;  %v2970_v28 = vpack.c.b16 %v859_v23, %v859_v23 }
  0xa7   :  { %228 = vrot.lane.b32.xlu2 %v218_v5, %s2801_s1  ;;  %226 = vrot.lane.b32.xlu1 %v217_v6, %s2801_s1 }
  0xab   :  { %v199_v7 = vld [vmem:[#allocation2 + $0x10] sm:$0xff]  ;;  %v200_v8 = vld [vmem:[#allocation2 + $0x18] sm:$0xff]  }
  0xac   :  { %v212_v9 = vunpack.c.l.b16 %v199_v7  ;;  %v214_v10 = vunpack.c.l.b16 %v200_v8  ;;  %v213_v11 = vunpack.c.h.b16 %v199_v7  ;;  %v861_v29 = vunpack.c.h.b16 %v200_v8 }
  0xae   :  { %v219_v12 = vpack.c.b16 %v212_v9, %v212_v9  ;;  %v221_v13 = vpack.c.b16 %v214_v10, %v214_v10  ;;  %v220_v14 = vpack.c.b16 %v213_v11, %v213_v11  ;;  %v2978_v30 = vpack.c.b16 %v861_v29, %v861_v29 }
  0xb0   :  { %230 = vrot.lane.b32.xlu2 %v219_v12, %s2801_s1  ;;  %234 = vrot.lane.b32.xlu1 %v221_v13, %s2801_s1 }
  0xb1   :  { %232 = vrot.lane.b32.xlu0 %v220_v14, %s2801_s1 }
  0xb8   :  { %348 = vrot.lane.b32.xlu1 %v217_v6, %s2802_s13  ;;  %344 = vrot.lane.b32.xlu2 %v215_v59, %s2802_s13 }
  0xb9   :  { %346 = vrot.lane.b32.xlu0 %v216_v58, %s2802_s13 }
  0xc0   :  { %354 = vrot.lane.b32.xlu1 %v220_v14, %s2802_s13  ;;  %350 = vrot.lane.b32.xlu2 %v218_v5, %s2802_s13 }
  0xc1   :  { %352 = vrot.lane.b32.xlu0 %v219_v12, %s2802_s13 }
  0xc8   :  { %468 = vrot.lane.b32.xlu1 %v216_v58, %s2803_s14  ;;  %356 = vrot.lane.b32.xlu2 %v221_v13, %s2802_s13 }
  0xc9   :  { %466 = vrot.lane.b32.xlu0 %v215_v59, %s2803_s14 }
  0xd0   :  { %474 = vrot.lane.b32.xlu1 %v219_v12, %s2803_s14  ;;  %470 = vrot.lane.b32.xlu2 %v217_v6, %s2803_s14 }
  0xd1   :  { %472 = vrot.lane.b32.xlu0 %v218_v5, %s2803_s14 }
  0xd8   :  { %594 = vrot.lane.b32.xlu1 %v215_v59, %s2804_s15  ;;  %476 = vrot.lane.b32.xlu2 %v220_v14, %s2803_s14 }
  0xd9   :  { %478 = vrot.lane.b32.xlu0 %v221_v13, %s2803_s14 }
  0xe0   :  { %600 = vrot.lane.b32.xlu1 %v218_v5, %s2804_s15  ;;  %596 = vrot.lane.b32.xlu2 %v216_v58, %s2804_s15 }
  0xe1   :  { %598 = vrot.lane.b32.xlu0 %v217_v6, %s2804_s15 }
  0xe8   :  { %606 = vrot.lane.b32.xlu1 %v221_v13, %s2804_s15  ;;  %602 = vrot.lane.b32.xlu2 %v219_v12, %s2804_s15 }
  0xe9   :  { %604 = vrot.lane.b32.xlu0 %v220_v14, %s2804_s15  ;;  %v1379_v14 = vld [vmem:[%s3571_s5] sm:$0xff] }
  0xf0   :  { %873 = vrot.lane.b32.xlu1 %v2953_v18, %s2805_s16  ;;  %869 = vrot.lane.b32.xlu2 %v2955_v19, %s2805_s16 }
  0xf1   :  { %871 = vrot.lane.b32.xlu0 %v2957_v20, %s2805_s16 }
  0xf8   :  { %879 = vrot.lane.b32.xlu1 %v2966_v24, %s2805_s16  ;;  %875 = vrot.lane.b32.xlu2 %v2968_v25, %s2805_s16 }
  0xf9   :  { %877 = vrot.lane.b32.xlu0 %v2970_v28, %s2805_s16 }
 0x100   :  { %999 = vrot.lane.b32.xlu1 %v2957_v20, %s2806_s17  ;;  %881 = vrot.lane.b32.xlu2 %v2978_v30, %s2805_s16 }
 0x101   :  { %997 = vrot.lane.b32.xlu0 %v2955_v19, %s2806_s17  ;;  %v229_v31 = vpop.permute.xlu2 %228 }
 0x108   :  { %1005 = vrot.lane.b32.xlu1 %v2970_v28, %s2806_s17  ;;  %1001 = vrot.lane.b32.xlu2 %v2953_v18, %s2806_s17 }
 0x109   :  { %1003 = vrot.lane.b32.xlu0 %v2968_v25, %s2806_s17 }
 0x10a   :  { %v231_v32 = vpop.permute.xlu2 %230 }
 0x10b   :  { %v240_v33 = vsel %vm236_vm9, %v229_v31, %v231_v32 }
 0x10c   :  { %v258_v34 = vsel %vm247_vm10, %v240_v33, 0 }
 0x10d   :  { %312 = vmatpush.bf16.msra.mxu1 %v258_v34 }
 0x110   :  { %1125 = vrot.lane.b32.xlu1 %v2955_v19, %s2807_s18  ;;  %1007 = vrot.lane.b32.xlu2 %v2966_v24, %s2806_s17 }
 0x111   :  { %1009 = vrot.lane.b32.xlu0 %v2978_v30, %s2806_s17  ;;  %v225_v36 = vpop.permute.xlu1 %224  ;;  %v223_v37 = vpop.permute.xlu0 %222  ;;  %2641 = vmatmul.msk.bf16.vlgmr.msra.gmra.mxu1 %vm243_vm11, %v2637_v35 }
 0x112   :  { %v237_v40 = vsel %vm236_vm9, %v223_v37, %v225_v36  ;;  %v345_v44 = vpop.permute.xlu2 %344 }
 0x113   :  { %v249_v42 = vsel %vm247_vm10, %v237_v40, 0  ;;  %v2650_v40 = vld [vmem:[%s3570_s4 + $0x8] sm:$0xf] }
 0x114   :  { %273 = vmatpush.bf16.msrb.mxu2 %v249_v42 }
 0x117   :  { %2638 = vmatmul.msk.bf16.vlgmr.msrb.gmra.mxu2 %vm243_vm11, %v2637_v35 }
 0x118   :  { %1131 = vrot.lane.b32.xlu1 %v2968_v25, %s2807_s18  ;;  %1127 = vrot.lane.b32.xlu2 %v2957_v20, %s2807_s18 }
 0x119   :  { %1129 = vrot.lane.b32.xlu0 %v2953_v18, %s2807_s18  ;;  %v227_v45 = vpop.permute.xlu1 %226 }
 0x11a   :  { %v239_v46 = vsel %vm236_vm9, %v227_v45, %v229_v31  ;;  %v238_v47 = vsel %vm236_vm9, %v225_v36, %v227_v45  ;;  %v351_v50 = vpop.permute.xlu2 %350 }
 0x11b   :  { %v255_v48 = vsel %vm247_vm10, %v239_v46, 0  ;;  %v252_v49 = vsel %vm247_vm10, %v238_v47, 0 }
 0x11c   :  { %286 = vmatpush.bf16.msrb.mxu3 %v252_v49  ;;  %299 = vmatpush.bf16.msra.mxu0 %v255_v48 }
 0x11f   :  { %2639 = vmatmul.msk.bf16.vlgmr.msrb.gmra.mxu3 %vm243_vm11, %v2637_v35  ;;  %2640 = vmatmul.msk.bf16.vlgmr.msra.gmra.mxu0 %vm243_vm11, %v2637_v35 }
 0x120   :  { %1137 = vrot.lane.b32.xlu1 %v2978_v30, %s2807_s18  ;;  %1133 = vrot.lane.b32.xlu2 %v2970_v28, %s2807_s18 }
 0x121   :  { %1135 = vrot.lane.b32.xlu0 %v2966_v24, %s2807_s18 }
 0x122   :  { %v235_v51 = vpop.permute.xlu1 %234  ;;  %v357_v58 = vpop.permute.xlu2 %356 }
 0x123   :  { %v233_v52 = vpop.permute.xlu0 %232 }
 0x124   :  { %v241_v53 = vsel %vm236_vm9, %v231_v32, %v233_v52  ;;  %v242_v54 = vsel %vm236_vm9, %v233_v52, %v235_v51 }
 0x125   :  { %v261_v55 = vsel %vm247_vm10, %v241_v53, 0  ;;  %v264_v57 = vsel %vm247_vm10, %v242_v54, 0 }
 0x126   :  { %325 = vmatpush.bf16.msra.mxu2 %v261_v55  ;;  %338 = vmatpush.bf16.msra.mxu3 %v264_v57 }
 0x128   :  { %1257 = vrot.lane.b32.xlu1 %v2953_v18, %s2808_s21  ;;  %1253 = vrot.lane.b32.xlu2 %v2955_v19, %s2808_s21 }
 0x129   :  { %1255 = vrot.lane.b32.xlu0 %v2957_v20, %s2808_s21  ;;  %2642 = vmatmul.msk.bf16.vlgmr.msra.gmra.mxu2 %vm243_vm11, %v2637_v35 }
 0x12a   :  { %v349_v59 = vpop.permute.xlu1 %348  ;;  %v471_v8 = vpop.permute.xlu2 %470 }
 0x12b   :  { %v361_v60 = vsel %vm358_vm12, %v349_v59, %v351_v50  ;;  %v347_v62 = vpop.permute.xlu0 %346 }
 0x12c   :  { %v375_v63 = vsel %vm247_vm10, %v361_v60, 0  ;;  %v359_v0 = vsel %vm358_vm12, %v345_v44, %v347_v62  ;;  %v360_v1 = vsel %vm358_vm12, %v347_v62, %v349_v59  ;;  %v744_v60 = vsel %vm247_vm10, %v2955_v19, 0 }
 0x12d   :  { %v369_v2 = vsel %vm247_vm10, %v359_v0, 0  ;;  %v372_v3 = vsel %vm247_vm10, %v360_v1, 0  ;;  %419 = vmatpush.bf16.msrb.mxu2 %v375_v63  ;;  %v747_v19 = vsel %vm247_vm10, %v2957_v20, 0 }
 0x12e   :  { %393 = vmatpush.bf16.msrb.mxu0 %v369_v2  ;;  %406 = vmatpush.bf16.msrb.mxu1 %v372_v3 }
 0x12f   :  { %2643 = vmatmul.msk.bf16.vlgmr.msra.gmra.mxu3 %vm243_vm11, %v2637_v35 }
 0x130   :  { %1263 = vrot.lane.b32.xlu1 %v2966_v24, %s2808_s21  ;;  %1259 = vrot.lane.b32.xlu2 %v2968_v25, %s2808_s21 }
 0x131   :  { %1261 = vrot.lane.b32.xlu0 %v2970_v28, %s2808_s21  ;;  %2644 = vmatmul.msk.bf16.vlgmr.msrb.gmra.mxu0 %vm243_vm11, %v201_v4 }
 0x132   :  { %2645 = vmatmul.msk.bf16.vlgmr.msrb.gmra.mxu1 %vm243_vm11, %v201_v4  ;;  %v355_v5 = vpop.permute.xlu1 %354  ;;  %v477_v29 = vpop.permute.xlu2 %476 }
 0x133   :  { %v364_v6 = vsel %vm358_vm12, %v355_v5, %v357_v58  ;;  %v353_v7 = vpop.permute.xlu0 %352 }
 0x134   :  { %v384_v9 = vsel %vm247_vm10, %v364_v6, 0  ;;  %v362_v10 = vsel %vm358_vm12, %v351_v50, %v353_v7  ;;  %v363_v11 = vsel %vm358_vm12, %v353_v7, %v355_v5  ;;  %v750_v5 = vsel %vm247_vm10, %v2953_v18, 0 }
 0x135   :  { %v378_v12 = vsel %vm247_vm10, %v362_v10, 0  ;;  %v381_v13 = vsel %vm247_vm10, %v363_v11, 0  ;;  %458 = vmatpush.bf16.msra.mxu1 %v384_v9  ;;  %v753_v6 = vsel %vm247_vm10, %v2968_v25, 0  ;;  %v756_v7 = vsel %vm247_vm10, %v2970_v28, 0 }
 0x136   :  { %432 = vmatpush.bf16.msrb.mxu3 %v378_v12  ;;  %445 = vmatpush.bf16.msra.mxu0 %v381_v13  ;;  %v759_v25 = vsel %vm247_vm10, %v2966_v24, 0 }
 0x138   :  { %1265 = vrot.lane.b32.xlu2 %v2978_v30, %s2808_s21 }
 0x139   :  { %1382 = vperm.xlu0 %2772, %v1379_v14   ;;  %2646 = vmatmul.msk.bf16.vlgmr.msrb.gmra.mxu2 %vm243_vm11, %v201_v4 }
 0x13a   :  { %v469_v15 = vpop.permute.xlu1 %468  ;;  %v597_v42 = vpop.permute.xlu2 %596 }
 0x13b   :  { %v482_v16 = vsel %vm480_vm13, %v469_v15, %v471_v8  ;;  %v467_v17 = vpop.permute.xlu0 %466 }
 0x13c   :  { %v494_v21 = vsel %vm247_vm10, %v482_v16, 0  ;;  %v481_v22 = vsel %vm480_vm13, %v467_v17, %v469_v15  ;;  %v2664_v15 = vld [vmem:[%s3570_s4 + $0x10] sm:$0xf] }
 0x13d   :  { %v491_v23 = vsel %vm247_vm10, %v481_v22, 0  ;;  %528 = vmatpush.bf16.msra.mxu3 %v494_v21 }
 0x13e   :  { %515 = vmatpush.bf16.msra.mxu2 %v491_v23 }
 0x13f   :  { %2647 = vmatmul.msk.bf16.vlgmr.msrb.gmra.mxu3 %vm243_vm11, %v201_v4 }
 0x141   :  { %2648 = vmatmul.msk.bf16.vlgmr.msra.gmra.mxu0 %vm243_vm11, %v201_v4 }
 0x142   :  { %2649 = vmatmul.msk.bf16.vlgmr.msra.gmra.mxu1 %vm243_vm11, %v201_v4  ;;  %v475_v30 = vpop.permute.xlu1 %474  ;;  %v603_v50 = vpop.permute.xlu2 %602  ;;  %v2657_v4 = vld [vmem:[%s3570_s4 + $0xc] sm:$0xf] }
 0x143   :  { %v485_v31 = vsel %vm480_vm13, %v475_v30, %v477_v29  ;;  %v473_v32 = vpop.permute.xlu0 %472 }
 0x144   :  { %v503_v33 = vsel %vm247_vm10, %v485_v31, 0  ;;  %v483_v34 = vsel %vm480_vm13, %v471_v8, %v473_v32  ;;  %v484_v35 = vsel %vm480_vm13, %v473_v32, %v475_v30 }
 0x145   :  { %v497_v36 = vsel %vm247_vm10, %v483_v34, 0  ;;  %v500_v37 = vsel %vm247_vm10, %v484_v35, 0  ;;  %567 = vmatpush.bf16.msrb.mxu2 %v503_v33  ;;  %v3142_v34 = vpop.f32.mrf.mxu1 }
 0x146   :  { %541 = vmatpush.bf16.msrb.mxu0 %v497_v36  ;;  %554 = vmatpush.bf16.msrb.mxu1 %v500_v37 }
 0x149   :  { %2651 = vmatmul.msk.bf16.vlgmr.msra.gmra.mxu2 %vm243_vm11, %v2650_v40 }
 0x14a   :  { %v595_v44 = vpop.permute.xlu1 %594  ;;  %v870_v8 = vpop.permute.xlu2 %869 }
 0x14b   :  { %v609_v45 = vsel %vm608_vm14, %v595_v44, %v597_v42  ;;  %v479_v46 = vpop.permute.xlu0 %478 }
 0x14c   :  { %v619_v47 = vsel %vm247_vm10, %v609_v45, 0  ;;  %v486_v48 = vsel %vm480_vm13, %v477_v29, %v479_v46  ;;  %v2671_v46 = vld [vmem:[%s3570_s4 + $0x14] sm:$0xf] }
 0x14d   :  { %v506_v49 = vsel %vm247_vm10, %v486_v48, 0  ;;  %643 = vmatpush.bf16.msra.mxu0 %v619_v47 }
 0x14e   :  { %580 = vmatpush.bf16.msrb.mxu3 %v506_v49 }
 0x14f   :  { %2652 = vmatmul.msk.bf16.vlgmr.msra.gmra.mxu3 %vm243_vm11, %v2650_v40 }
 0x151   :  { %2653 = vmatmul.msk.bf16.vlgmr.msrb.gmra.mxu0 %vm243_vm11, %v2650_v40 }
 0x152   :  { %2654 = vmatmul.msk.bf16.vlgmr.msrb.gmra.mxu1 %vm243_vm11, %v2650_v40  ;;  %v601_v51 = vpop.permute.xlu1 %600  ;;  %v876_v12 = vpop.permute.xlu2 %875 }
 0x153   :  { %v612_v52 = vsel %vm608_vm14, %v601_v51, %v603_v50  ;;  %v599_v53 = vpop.permute.xlu0 %598 }
 0x154   :  { %v628_v54 = vsel %vm247_vm10, %v612_v52, 0  ;;  %v610_v55 = vsel %vm608_vm14, %v597_v42, %v599_v53  ;;  %v611_v57 = vsel %vm608_vm14, %v599_v53, %v601_v51  ;;  %v3159_v51 = vpop.f32.mrf.mxu2 }
 0x155   :  { %v622_v58 = vsel %vm247_vm10, %v610_v55, 0  ;;  %v625_v59 = vsel %vm247_vm10, %v611_v57, 0  ;;  %682 = vmatpush.bf16.msra.mxu3 %v628_v54  ;;  %v3163_v55 = vpop.f32.mrf.mxu0 }
 0x156   :  { %656 = vmatpush.bf16.msra.mxu1 %v622_v58  ;;  %669 = vmatpush.bf16.msra.mxu2 %v625_v59 }
 0x159   :  { %2655 = vmatmul.msk.bf16.vlgmr.msrb.gmra.mxu2 %vm243_vm11, %v2650_v40 }
 0x15a   :  { %768 = vmatpush.bf16.msrb.mxu2 %v744_v60  ;;  %v607_v62 = vpop.permute.xlu1 %606  ;;  %v882_v21 = vpop.permute.xlu2 %881 }
 0x15b   :  { %v605_v63 = vpop.permute.xlu0 %604 }
 0x15c   :  { %v613_v0 = vsel %vm608_vm14, %v603_v50, %v605_v63  ;;  %v614_v1 = vsel %vm608_vm14, %v605_v63, %v607_v62  ;;  %v3168_v63 = vpop.f32.mrf.mxu3 }
 0x15d   :  { %v631_v2 = vsel %vm247_vm10, %v613_v0, 0  ;;  %v634_v3 = vsel %vm247_vm10, %v614_v1, 0 }
 0x15e   :  { %695 = vmatpush.bf16.msrb.mxu0 %v631_v2  ;;  %708 = vmatpush.bf16.msrb.mxu1 %v634_v3 }
 0x15f   :  { %2656 = vmatmul.msk.bf16.vlgmr.msrb.gmra.mxu3 %vm243_vm11, %v2650_v40 }
 0x160   :  { %781 = vmatpush.bf16.msrb.mxu3 %v747_v19 }
 0x161   :  { %2658 = vmatmul.msk.bf16.vlgmr.msra.gmra.mxu0 %vm243_vm11, %v2657_v4 }
 0x162   :  { %2659 = vmatmul.msk.bf16.vlgmr.msra.gmra.mxu1 %vm243_vm11, %v2657_v4  ;;  %794 = vmatpush.bf16.msra.mxu0 %v750_v5  ;;  %v874_v9 = vpop.permute.xlu1 %873  ;;  %v1002_v37 = vpop.permute.xlu2 %1001 }
 0x163   :  { %807 = vmatpush.bf16.msra.mxu1 %v753_v6  ;;  %v872_v20 = vpop.permute.xlu0 %871  ;;  %v886_v14 = vsel %vm883_vm15, %v874_v9, %v876_v12 }
 0x164   :  { %v884_v10 = vsel %vm883_vm15, %v870_v8, %v872_v20  ;;  %v885_v18 = vsel %vm883_vm15, %v872_v20, %v874_v9  ;;  %v900_v16 = vsel %vm247_vm10, %v886_v14, 0 }
 0x165   :  { %v894_v11 = vsel %vm247_vm10, %v884_v10, 0  ;;  %v897_v28 = vsel %vm247_vm10, %v885_v18, 0 }
 0x169   :  { %2660 = vmatmul.msk.bf16.vlgmr.msra.gmra.mxu2 %vm243_vm11, %v2657_v4 }
 0x16a   :  { %820 = vmatpush.bf16.msra.mxu2 %v756_v7  ;;  %v880_v24 = vpop.permute.xlu1 %879  ;;  %v1008_v54 = vpop.permute.xlu2 %1007 }
 0x16b   :  { %v878_v13 = vpop.permute.xlu0 %877  ;;  %v889_v29 = vsel %vm883_vm15, %v880_v24, %v882_v21 }
 0x16c   :  { %v887_v17 = vsel %vm883_vm15, %v876_v12, %v878_v13  ;;  %v888_v22 = vsel %vm883_vm15, %v878_v13, %v880_v24  ;;  %v909_v32 = vsel %vm247_vm10, %v889_v29, 0 }
 0x16d   :  { %v903_v30 = vsel %vm247_vm10, %v887_v17, 0  ;;  %v906_v31 = vsel %vm247_vm10, %v888_v22, 0 }
 0x16f   :  { %2661 = vmatmul.msk.bf16.vlgmr.msra.gmra.mxu3 %vm243_vm11, %v2657_v4 }
 0x170   :  { %833 = vmatpush.bf16.msra.mxu3 %v759_v25  ;;  %v2678_v25 = vld [vmem:[%s3570_s4 + $0x18] sm:$0xf] }
 0x171   :  { %2662 = vmatmul.msk.bf16.vlgmr.msrb.gmra.mxu0 %vm243_vm11, %v2657_v4 }
 0x172   :  { %2663 = vmatmul.msk.bf16.vlgmr.msrb.gmra.mxu1 %vm243_vm11, %v2657_v4  ;;  %918 = vmatpush.bf16.msrb.mxu0 %v894_v11  ;;  %v1000_v33 = vpop.permute.xlu1 %999  ;;  %v1128_v3 = vpop.permute.xlu2 %1127 }
 0x173   :  { %931 = vmatpush.bf16.msrb.mxu1 %v897_v28  ;;  %v998_v23 = vpop.permute.xlu0 %997  ;;  %v1013_v42 = vsel %vm1011_vm0, %v1000_v33, %v1002_v37 }
 0x174   :  { %v1012_v35 = vsel %vm1011_vm0, %v998_v23, %v1000_v33  ;;  %v1025_v48 = vsel %vm247_vm10, %v1013_v42, 0 }
 0x175   :  { %v1022_v40 = vsel %vm247_vm10, %v1012_v35, 0 }
 0x179   :  { %2665 = vmatmul.msk.bf16.vlgmr.msrb.gmra.mxu2 %vm243_vm11, %v2664_v15 }
 0x17a   :  { %944 = vmatpush.bf16.msrb.mxu2 %v900_v16  ;;  %v1006_v44 = vpop.permute.xlu1 %1005  ;;  %v1134_v28 = vpop.permute.xlu2 %1133 }
 0x17b   :  { %v1004_v36 = vpop.permute.xlu0 %1003  ;;  %v1016_v57 = vsel %vm1011_vm0, %v1006_v44, %v1008_v54 }
 0x17c   :  { %v1014_v45 = vsel %vm1011_vm0, %v1002_v37, %v1004_v36  ;;  %v1015_v49 = vsel %vm1011_vm0, %v1004_v36, %v1006_v44  ;;  %v1034_v60 = vsel %vm247_vm10, %v1016_v57, 0 }
 0x17d   :  { %v1028_v50 = vsel %vm247_vm10, %v1014_v45, 0  ;;  %v1031_v52 = vsel %vm247_vm10, %v1015_v49, 0 }
 0x17f   :  { %2666 = vmatmul.msk.bf16.vlgmr.msrb.gmra.mxu3 %vm243_vm11, %v2664_v15 }
 0x180   :  { %957 = vmatpush.bf16.msrb.mxu3 %v903_v30 }
 0x181   :  { %2667 = vmatmul.msk.bf16.vlgmr.msra.gmra.mxu0 %vm243_vm11, %v2664_v15 }
 0x182   :  { %2668 = vmatmul.msk.bf16.vlgmr.msra.gmra.mxu1 %vm243_vm11, %v2664_v15  ;;  %970 = vmatpush.bf16.msra.mxu0 %v906_v31  ;;  %v1126_v59 = vpop.permute.xlu1 %1125  ;;  %v1254_v35 = vpop.permute.xlu2 %1253 }
 0x183   :  { %983 = vmatpush.bf16.msra.mxu1 %v909_v32  ;;  %v1010_v53 = vpop.permute.xlu0 %1009  ;;  %v1140_v4 = vsel %vm1139_vm1, %v1126_v59, %v1128_v3  ;;  %v2685_v59 = vld [vmem:[%s3570_s4 + $0x1c] sm:$0xf] }
 0x184   :  { %v1017_v0 = vsel %vm1011_vm0, %v1008_v54, %v1010_v53  ;;  %v1150_v6 = vsel %vm247_vm10, %v1140_v4, 0 }
 0x185   :  { %v1037_v19 = vsel %vm247_vm10, %v1017_v0, 0 }
 0x189   :  { %2669 = vmatmul.msk.bf16.vlgmr.msra.gmra.mxu2 %vm243_vm11, %v2664_v15 }
 0x18a   :  { %1046 = vmatpush.bf16.msra.mxu2 %v1022_v40  ;;  %v1132_v7 = vpop.permute.xlu1 %1131  ;;  %v1260_v53 = vpop.permute.xlu2 %1259 }
 0x18b   :  { %v1130_v1 = vpop.permute.xlu0 %1129  ;;  %v1143_v14 = vsel %vm1139_vm1, %v1132_v7, %v1134_v28 }
 0x18c   :  { %v1141_v5 = vsel %vm1139_vm1, %v1128_v3, %v1130_v1  ;;  %v1142_v18 = vsel %vm1139_vm1, %v1130_v1, %v1132_v7  ;;  %v1159_v21 = vsel %vm247_vm10, %v1143_v14, 0 }
 0x18d   :  { %v1153_v8 = vsel %vm247_vm10, %v1141_v5, 0  ;;  %v1156_v12 = vsel %vm247_vm10, %v1142_v18, 0 }
 0x18e   :  { %v3152_v47 = vpop.f32.mrf.mxu1 }
 0x18f   :  { %2670 = vmatmul.msk.bf16.vlgmr.msra.gmra.mxu3 %vm243_vm11, %v2664_v15 }
 0x190   :  { %1059 = vmatpush.bf16.msra.mxu3 %v1025_v48 }
 0x191   :  { %2672 = vmatmul.msk.bf16.vlgmr.msrb.gmra.mxu0 %vm243_vm11, %v2671_v46 }
 0x192   :  { %2673 = vmatmul.msk.bf16.vlgmr.msrb.gmra.mxu1 %vm243_vm11, %v2671_v46  ;;  %1072 = vmatpush.bf16.msrb.mxu0 %v1028_v50  ;;  %v1138_v15 = vpop.permute.xlu1 %1137  ;;  %v1266_v18 = vpop.permute.xlu2 %1265 }
 0x193   :  { %1085 = vmatpush.bf16.msrb.mxu1 %v1031_v52  ;;  %v1136_v11 = vpop.permute.xlu0 %1135 }
 0x194   :  { %v1144_v16 = vsel %vm1139_vm1, %v1134_v28, %v1136_v11  ;;  %v1145_v22 = vsel %vm1139_vm1, %v1136_v11, %v1138_v15 }
 0x195   :  { %v1162_v31 = vsel %vm247_vm10, %v1144_v16, 0  ;;  %v1165_v32 = vsel %vm247_vm10, %v1145_v22, 0 }
 0x196   :  { %v316_v58 = vpop.f32.mrf.mxu1 }
 0x199   :  { %2674 = vmatmul.msk.bf16.vlgmr.msrb.gmra.mxu2 %vm243_vm11, %v2671_v46 }
 0x19a   :  { %1098 = vmatpush.bf16.msrb.mxu2 %v1034_v60  ;;  %v275_v62 = vpop.f32.mrf.mxu2  ;;  %v1258_v45 = vpop.permute.xlu1 %1257 }
 0x19b   :  { %v1256_v33 = vpop.permute.xlu0 %1255  ;;  %v1270_v57 = vsel %vm1267_vm2, %v1258_v45, %v1260_v53 }
 0x19c   :  { %v301_v2 = vpop.f32.mrf.mxu0  ;;  %v1268_v40 = vsel %vm1267_vm2, %v1254_v35, %v1256_v33  ;;  %v1269_v49 = vsel %vm1267_vm2, %v1256_v33, %v1258_v45  ;;  %v1284_v4 = vsel %vm247_vm10, %v1270_v57, 0 }
 0x19d   :  { %v1281_v60 = vsel %vm247_vm10, %v1269_v49, 0 }
 0x19f   :  { %2675 = vmatmul.msk.bf16.vlgmr.msrb.gmra.mxu3 %vm243_vm11, %v2671_v46 }
 0x1a0   :  { %1111 = vmatpush.bf16.msrb.mxu3 %v1037_v19 }
 0x1a1   :  { %2676 = vmatmul.msk.bf16.vlgmr.msra.gmra.mxu0 %vm243_vm11, %v2671_v46 }
 0x1a2   :  { %2677 = vmatmul.msk.bf16.vlgmr.msra.gmra.mxu1 %vm243_vm11, %v2671_v46  ;;  %1174 = vmatpush.bf16.msra.mxu0 %v1150_v6  ;;  %v277_v20 = vpop.f32.mrf.mxu2  ;;  %v288_v9 = vpop.f32.mrf.mxu3  ;;  %v1278_v46 = vsel %vm247_vm10, %v1268_v40, 0 }
 0x1a3   :  { %1187 = vmatpush.bf16.msra.mxu1 %v1153_v8  ;;  %v1262_v50 = vpop.permute.xlu0 %1261  ;;  %v1264_v19 = vpop.permute.xlu1 %1263 }
 0x1a4   :  { %v303_v10 = vpop.f32.mrf.mxu0  ;;  %v1272_v8 = vsel %vm1267_vm2, %v1262_v50, %v1264_v19  ;;  %v1273_v11 = vsel %vm1267_vm2, %v1264_v19, %v1266_v18 }
 0x1a5   :  { %v1290_v10 = vsel %vm247_vm10, %v1272_v8, 0  ;;  %v1293_v14 = vsel %vm247_vm10, %v1273_v11, 0 }
 0x1a9   :  { %2679 = vmatmul.msk.bf16.vlgmr.msra.gmra.mxu2 %vm243_vm11, %v2678_v25 }
 0x1aa   :  { %1200 = vmatpush.bf16.msra.mxu2 %v1156_v12  ;;  %v290_v13 = vpop.f32.mrf.mxu3 }
 0x1ac   :  { %v327_v24 = vpop.f32.mrf.mxu2 }
 0x1ae   :  { %v395_v17 = vpop.f32.mrf.mxu0 }
 0x1af   :  { %v396_v23 = vadd.f32 %v395_v17, %v275_v62  ;;  %v408_v29 = vpop.f32.mrf.mxu1  ;;  %2680 = vmatmul.msk.bf16.vlgmr.msra.gmra.mxu3 %vm243_vm11, %v2678_v25  ;;  %v1271_v62 = vsel %vm1267_vm2, %v1260_v53, %v1262_v50 }
 0x1b0   :  { %v3190_v30 = vadd.f32 %v408_v29, %v288_v9  ;;  %1213 = vmatpush.bf16.msra.mxu3 %v1159_v21 }
 0x1b1   :  { %2681 = vmatmul.msk.bf16.vlgmr.msrb.gmra.mxu0 %vm243_vm11, %v2678_v25 }
 0x1b2   :  { %2682 = vmatmul.msk.bf16.vlgmr.msrb.gmra.mxu1 %vm243_vm11, %v2678_v25  ;;  %1226 = vmatpush.bf16.msrb.mxu0 %v1162_v31  ;;  %v340_v36 = vpop.f32.mrf.mxu3 }
 0x1b3   :  { %1239 = vmatpush.bf16.msrb.mxu1 %v1165_v32 }
 0x1b4   :  { %v329_v37 = vpop.f32.mrf.mxu2 }
 0x1b6   :  { %v397_v42 = vpop.f32.mrf.mxu0 }
 0x1b7   :  { %v410_v44 = vpop.f32.mrf.mxu1 }
 0x1b9   :  { %2683 = vmatmul.msk.bf16.vlgmr.msrb.gmra.mxu2 %vm243_vm11, %v2678_v25 }
 0x1ba   :  { %1302 = vmatpush.bf16.msrb.mxu2 %v1278_v46  ;;  %v342_v48 = vpop.f32.mrf.mxu3 }
 0x1bc   :  { %v421_v52 = vpop.f32.mrf.mxu2 }
 0x1bd   :  { %v422_v54 = vadd.f32 %v421_v52, %v301_v2  ;;  %v1287_v2 = vsel %vm247_vm10, %v1271_v62, 0 }
 0x1be   :  { %v447_v58 = vpop.f32.mrf.mxu0 }
 0x1bf   :  { %v448_v0 = vadd.f32 %v447_v58, %v327_v24  ;;  %v460_v1 = vpop.f32.mrf.mxu1  ;;  %2684 = vmatmul.msk.bf16.vlgmr.msrb.gmra.mxu3 %vm243_vm11, %v2678_v25 }
 0x1c0   :  { %v461_v3 = vadd.f32 %v460_v1, %v340_v36  ;;  %1315 = vmatpush.bf16.msrb.mxu3 %v1281_v60 }
 0x1c1   :  { %2686 = vmatmul.msk.bf16.vlgmr.msra.gmra.mxu0 %vm243_vm11, %v2685_v59 }
 0x1c2   :  { %2687 = vmatmul.msk.bf16.vlgmr.msra.gmra.mxu1 %vm243_vm11, %v2685_v59  ;;  %1328 = vmatpush.bf16.msra.mxu0 %v1284_v4  ;;  %v434_v5 = vpop.f32.mrf.mxu3 }
 0x1c3   :  { %1341 = vmatpush.bf16.msra.mxu1 %v1287_v2  ;;  %v435_v7 = vadd.f32 %v434_v5, %v3152_v47 }
 0x1c4   :  { %v423_v6 = vpop.f32.mrf.mxu2 }
 0x1c6   :  { %v449_v20 = vpop.f32.mrf.mxu0 }
 0x1c7   :  { %v462_v9 = vpop.f32.mrf.mxu1 }
 0x1c9   :  { %2688 = vmatmul.msk.bf16.vlgmr.msra.gmra.mxu2 %vm243_vm11, %v2685_v59 }
 0x1ca   :  { %1354 = vmatpush.bf16.msra.mxu2 %v1290_v10  ;;  %v436_v25 = vpop.f32.mrf.mxu3 }
 0x1cc   :  { %v517_v28 = vpop.f32.mrf.mxu2 }
 0x1cd   :  { %v586_v12 = vadd.f32 %v517_v28, %v396_v23  ;;  %v2692_v23 = vld [vmem:[%s3570_s4 + $0x20] sm:$0xf] }
 0x1ce   :  { %v543_v13 = vpop.f32.mrf.mxu0 }
 0x1cf   :  { %v588_v15 = vadd.f32 %v543_v13, %v422_v54  ;;  %v556_v47 = vpop.f32.mrf.mxu1  ;;  %2689 = vmatmul.msk.bf16.vlgmr.msra.gmra.mxu3 %vm243_vm11, %v2685_v59 }
 0x1d0   :  { %v589_v24 = vadd.f32 %v556_v47, %v435_v7  ;;  %1367 = vmatpush.bf16.msra.mxu3 %v1293_v14 }
 0x1d1   :  { %2690 = vmatmul.msk.bf16.vlgmr.msrb.gmra.mxu0 %vm243_vm11, %v2685_v59 }
 0x1d2   :  { %2691 = vmatmul.msk.bf16.vlgmr.msrb.gmra.mxu1 %vm243_vm11, %v2685_v59  ;;  %v530_v16 = vpop.f32.mrf.mxu3 }
 0x1d3   :  { %v587_v21 = vadd.f32 %v530_v16, %v3190_v30 }
 0x1d4   :  { %v519_v17 = vpop.f32.mrf.mxu2 }
 0x1d6   :  { %v545_v22 = vpop.f32.mrf.mxu0 }
 0x1d7   :  { %v558_v29 = vpop.f32.mrf.mxu1 }
 0x1d9   :  { %2693 = vmatmul.msk.bf16.vlgmr.msrb.gmra.mxu2 %vm243_vm11, %v2692_v23 }
 0x1da   :  { %v532_v31 = vpop.f32.mrf.mxu3 }
 0x1dc   :  { %v569_v32 = vpop.f32.mrf.mxu2 }
 0x1dd   :  { %v590_v33 = vadd.f32 %v569_v32, %v448_v0 }
 0x1de   :  { %v645_v35 = vpop.f32.mrf.mxu0 }
 0x1df   :  { %v714_v36 = vadd.f32 %v645_v35, %v586_v12  ;;  %v658_v37 = vpop.f32.mrf.mxu1  ;;  %2694 = vmatmul.msk.bf16.vlgmr.msrb.gmra.mxu3 %vm243_vm11, %v2692_v23 }
 0x1e0   :  { %v715_v40 = vadd.f32 %v658_v37, %v587_v21 }
 0x1e1   :  { %2695 = vmatmul.msk.bf16.vlgmr.msra.gmra.mxu0 %vm243_vm11, %v2692_v23 }
 0x1e2   :  { %2696 = vmatmul.msk.bf16.vlgmr.msra.gmra.mxu1 %vm243_vm11, %v2692_v23  ;;  %v582_v30 = vpop.f32.mrf.mxu3 }
 0x1e3   :  { %v591_v44 = vadd.f32 %v582_v30, %v461_v3 }
 0x1e4   :  { %v571_v42 = vpop.f32.mrf.mxu2 }
 0x1e6   :  { %v647_v45 = vpop.f32.mrf.mxu0 }
 0x1e7   :  { %v660_v46 = vpop.f32.mrf.mxu1 }
 0x1e9   :  { %2697 = vmatmul.msk.bf16.vlgmr.msra.gmra.mxu2 %vm243_vm11, %v2692_v23 }
 0x1ea   :  { %v584_v48 = vpop.f32.mrf.mxu3 }
 0x1ec   :  { %v671_v49 = vpop.f32.mrf.mxu2 }
 0x1ed   :  { %v716_v50 = vadd.f32 %v671_v49, %v588_v15 }
 0x1ee   :  { %v697_v52 = vpop.f32.mrf.mxu0 }
 0x1ef   :  { %v718_v53 = vadd.f32 %v697_v52, %v590_v33  ;;  %v710_v54 = vpop.f32.mrf.mxu1  ;;  %2698 = vmatmul.msk.bf16.vlgmr.msra.gmra.mxu3 %vm243_vm11, %v2692_v23 }
 0x1f0   :  { %v719_v57 = vadd.f32 %v710_v54, %v591_v44 }
 0x1f2   :  { %v684_v58 = vpop.f32.mrf.mxu3 }
 0x1f3   :  { %v717_v60 = vadd.f32 %v684_v58, %v589_v24 }
 0x1f4   :  { %v673_v59 = vpop.f32.mrf.mxu2 }
 0x1f6   :  { %v699_v62 = vpop.f32.mrf.mxu0 }
 0x1f7   :  { %v712_v0 = vpop.f32.mrf.mxu1 }
 0x1fa   :  { %v686_v1 = vpop.f32.mrf.mxu3 }
 0x1fc   :  { %v770_v3 = vpop.f32.mrf.mxu2 }
 0x1fd   :  { %v839_v4 = vadd.f32 %v770_v3, %v714_v36 }
 0x1fe   :  { %v796_v2 = vpop.f32.mrf.mxu0 }
 0x1ff   :  { %v841_v19 = vadd.f32 %v796_v2, %v716_v50  ;;  %v809_v5 = vpop.f32.mrf.mxu1 }
 0x200   :  { %v842_v6 = vadd.f32 %v809_v5, %v717_v60 }
 0x202   :  { %v783_v7 = vpop.f32.mrf.mxu3 }
 0x203   :  { %v840_v20 = vadd.f32 %v783_v7, %v715_v40 }
 0x204   :  { %v772_v8 = vpop.f32.mrf.mxu2 }
 0x206   :  { %v798_v9 = vpop.f32.mrf.mxu0 }
 0x207   :  { %v811_v10 = vpop.f32.mrf.mxu1 }
 0x20a   :  { %v785_v18 = vpop.f32.mrf.mxu3 }
 0x20c   :  { %v822_v25 = vpop.f32.mrf.mxu2 }
 0x20d   :  { %v843_v11 = vadd.f32 %v822_v25, %v718_v53 }
 0x20e   :  { %v920_v28 = vpop.f32.mrf.mxu0 }
 0x20f   :  { %v989_v12 = vadd.f32 %v920_v28, %v839_v4  ;;  %v933_v13 = vpop.f32.mrf.mxu1 }
 0x210   :  { %v990_v14 = vadd.f32 %v933_v13, %v840_v20 }
 0x212   :  { %v835_v15 = vpop.f32.mrf.mxu3 }
 0x213   :  { %v844_v24 = vadd.f32 %v835_v15, %v719_v57 }
 0x214   :  { %v824_v47 = vpop.f32.mrf.mxu2 }
 0x216   :  { %v922_v16 = vpop.f32.mrf.mxu0 }
 0x217   :  { %v935_v17 = vpop.f32.mrf.mxu1 }
 0x21a   :  { %v837_v21 = vpop.f32.mrf.mxu3 }
 0x21b   :  { %v1383_v21 = vpop.permute.xlu0 %1382 }
 0x21c   :  { %v946_v22 = vpop.f32.mrf.mxu2 }
 0x21d   :  { %v991_v8 = vadd.f32 %v946_v22, %v841_v19 }
 0x21e   :  { %v972_v23 = vpop.f32.mrf.mxu0 }
 0x21f   :  { %v3230_v29 = vadd.f32 %v972_v23, %v843_v11  ;;  %v985_v31 = vpop.f32.mrf.mxu1 }
 0x220   :  { %v3232_v32 = vadd.f32 %v985_v31, %v844_v24 }
 0x222   :  { %v959_v33 = vpop.f32.mrf.mxu3 }
 0x223   :  { %v992_v20 = vadd.f32 %v959_v33, %v842_v6 }
 0x224   :  { %v948_v35 = vpop.f32.mrf.mxu2 }
 0x226   :  { %v974_v36 = vpop.f32.mrf.mxu0 }
 0x227   :  { %v987_v37 = vpop.f32.mrf.mxu1 }
 0x22a   :  { %v961_v40 = vpop.f32.mrf.mxu3 }
 0x22c   :  { %v1048_v30 = vpop.f32.mrf.mxu2 }
 0x22d   :  { %v1117_v9 = vadd.f32 %v1048_v30, %v989_v12 }
 0x22e   :  { %v1074_v42 = vpop.f32.mrf.mxu0 }
 0x22f   :  { %v1087_v44 = vpop.f32.mrf.mxu1  ;;  %v1119_v10 = vadd.f32 %v1074_v42, %v991_v8 }
 0x230   :  { %v1120_v25 = vadd.f32 %v1087_v44, %v992_v20 }
 0x232   :  { %v1061_v45 = vpop.f32.mrf.mxu3 }
 0x233   :  { %v1118_v23 = vadd.f32 %v1061_v45, %v990_v14 }
 0x234   :  { %v1050_v46 = vpop.f32.mrf.mxu2 }
 0x236   :  { %v1076_v48 = vpop.f32.mrf.mxu0 }
 0x237   :  { %v1089_v49 = vpop.f32.mrf.mxu1 }
 0x23a   :  { %v1063_v50 = vpop.f32.mrf.mxu3 }
 0x23c   :  { %v1100_v52 = vpop.f32.mrf.mxu2 }
 0x23d   :  { %v1121_v50 = vadd.f32 %v1100_v52, %v3230_v29 }
 0x23e   :  { %v1176_v53 = vpop.f32.mrf.mxu0 }
 0x23f   :  { %v1189_v54 = vpop.f32.mrf.mxu1  ;;  %v1245_v11 = vadd.f32 %v1176_v53, %v1117_v9 }
 0x240   :  { %v1246_v36 = vadd.f32 %v1189_v54, %v1118_v23 }
 0x242   :  { %v1113_v57 = vpop.f32.mrf.mxu3 }
 0x244   :  { %v1102_v58 = vpop.f32.mrf.mxu2 }
 0x246   :  { %v1178_v59 = vpop.f32.mrf.mxu0 }
 0x247   :  { %v1191_v60 = vpop.f32.mrf.mxu1 }
 0x24a   :  { %v1115_v62 = vpop.f32.mrf.mxu3 }
 0x24b   :  { %v1122_v62 = vadd.f32 %v1113_v57, %v3232_v32 }
 0x24c   :  { %v1202_v0 = vpop.f32.mrf.mxu2 }
 0x24d   :  { %v1247_v13 = vadd.f32 %v1202_v0, %v1119_v10 }
 0x24e   :  { %v1228_v1 = vpop.f32.mrf.mxu0 }
 0x24f   :  { %v1241_v3 = vpop.f32.mrf.mxu1  ;;  %v1249_v58 = vadd.f32 %v1228_v1, %v1121_v50 }
 0x250   :  { %v1250_v0 = vadd.f32 %v1241_v3, %v1122_v62 }
 0x252   :  { %v1215_v4 = vpop.f32.mrf.mxu3 }
 0x253   :  { %v1248_v15 = vadd.f32 %v1215_v4, %v1120_v25 }
 0x254   :  { %v1204_v2 = vpop.f32.mrf.mxu2 }
 0x256   :  { %v1230_v5 = vpop.f32.mrf.mxu0 }
 0x257   :  { %v1243_v7 = vpop.f32.mrf.mxu1 }
 0x25a   :  { %v1217_v18 = vpop.f32.mrf.mxu3 }
 0x25c   :  { %v1304_v28 = vpop.f32.mrf.mxu2 }
 0x25d   :  { %v1373_v47 = vadd.f32 %v1304_v28, %v1245_v11 }
 0x25e   :  { %v1330_v24 = vpop.f32.mrf.mxu0 }
 0x25f   :  { %v1375_v16 = vadd.f32 %v1330_v24, %v1247_v13  ;;  %v1343_v17 = vpop.f32.mrf.mxu1  ;;  %v1385_v37 = vadd.f32 %v1383_v21, %v1373_v47 }
 0x260   :  { %v1376_v31 = vadd.f32 %v1343_v17, %v1248_v15 }
 0x261   :  { %v1387_v35 = vadd.f32 %v1383_v21, %v1375_v16  ;;  %v1391_v42 = vmax.f32 %v1385_v37, 0.0 }
 0x262   :  { %v1388_v19 = vadd.f32 %v1383_v21, %v1376_v31  ;;  %v1317_v12 = vpop.f32.mrf.mxu3 }
 0x263   :  { %v1393_v6 = vmax.f32 %v1387_v35, 0.0  ;;  %v1374_v40 = vadd.f32 %v1317_v12, %v1246_v36  ;;  %v1397_v53 = vsel %vm2876_vm3, %v1391_v42, 0.0 }
 0x264   :  { %v1394_v22 = vmax.f32 %v1388_v19, 0.0  ;;  %v1306_v33 = vpop.f32.mrf.mxu2 }
 0x265   :  { %v1399_v30 = vsel %vm2893_vm5, %v1393_v6, 0.0  ;;  %v1386_v46 = vadd.f32 %v1383_v21, %v1374_v40 }
 0x266   :  { %v1400_v44 = vsel %vm2899_vm6, %v1394_v22, 0.0  ;;  %v1332_v48 = vpop.f32.mrf.mxu0 }
 0x267   :  { %v3238_v14 = vpack.c.bf16 %v1400_v44, %v1399_v30  ;;  %v1345_v45 = vpop.f32.mrf.mxu1  ;;  %v1392_v49 = vmax.f32 %v1386_v46, 0.0 }
 0x269   :  { %1407 = vst [vmem:[#allocation3 + $0xc] sm:$0xff] %v3238_v14  ;;  %v1398_v39 = vsel %vm2880_vm4, %v1392_v49, 0.0  ;;  %v2063_v35 = vunpack.c.l.b16 %v3238_v14  ;;  %v2064_v12 = vunpack.c.h.b16 %v3238_v14 }
 0x26a   :  { %v3246_v54 = vpack.c.bf16 %v1398_v39, %v1397_v53  ;;  %v1319_v43 = vpop.f32.mrf.mxu3 }
 0x26b   :  { %v3289_v19 = vpack.c.b16 %v2063_v35, %v2063_v35  ;;  %v3300_v40 = vpack.c.b16 %v2064_v12, %v2064_v12 }
 0x26c   :  { %v1356_v59 = vpop.f32.mrf.mxu2  ;;  %1406 = vst [vmem:[#allocation3 + $0x4] sm:$0xff] %v3246_v54  ;;  %v2062_v61 = vunpack.c.h.b16 %v3246_v54  ;;  %v2061_v31 = vunpack.c.l.b16 %v3246_v54  ;;  %v2699_v54 = vld [vmem:[%s3572_s6 + $0x4] sm:$0xf] }
 0x26d   :  { %v1377_v60 = vadd.f32 %v1356_v59, %v1249_v58 }
 0x26e   :  { %v3285_v36 = vpack.c.b16 %v2062_v61, %v2062_v61  ;;  %v3287_v37 = vpack.c.b16 %v2061_v31, %v2061_v31 }
 0x26f   :  { %v1389_v4 = vadd.f32 %v1383_v21, %v1377_v60 }
 0x271   :  { %v1395_v20 = vmax.f32 %v1389_v4, 0.0 }
 0x272   :  { %v1369_v2 = vpop.f32.mrf.mxu3 }
 0x273   :  { %v1378_v52 = vadd.f32 %v1369_v2, %v1250_v0  ;;  %v1410_v26 = vld [vmem:[#allocation3 + $0x8] sm:$0xff]  ;;  %v1409_v5 = vld [vmem:[#allocation3] sm:$0xff]  ;;  %v1401_v32 = vsel %vm2910_vm7, %v1395_v20, 0.0 }
 0x274   :  { %v1358_v29 = vpop.f32.mrf.mxu2  ;;  %v1422_v7 = vunpack.c.l.b16 %v1410_v26  ;;  %v1421_v27 = vunpack.c.h.b16 %v1409_v5  ;;  %v1420_v8 = vunpack.c.l.b16 %v1409_v5  ;;  %v1423_v28 = vunpack.c.h.b16 %v1410_v26 }
 0x275   :  { %v1390_v9 = vadd.f32 %v1383_v21, %v1378_v52 }
 0x276   :  { %v1429_v10 = vpack.c.b16 %v1422_v7, %v1422_v7  ;;  %v1428_v1 = vpack.c.b16 %v1421_v27, %v1421_v27  ;;  %v1427_v18 = vpack.c.b16 %v1420_v8, %v1420_v8  ;;  %v1430_v13 = vpack.c.b16 %v1423_v28, %v1423_v28 }
 0x277   :  { %v1396_v25 = vmax.f32 %v1390_v9, 0.0 }
 0x278   :  { %1438 = vrot.lane.b32.xlu0 %v1429_v10, %s2801_s1  ;;  %1436 = vrot.lane.b32.xlu2 %v1428_v1, %s2801_s1 }
 0x279   :  { %v1402_v57 = vsel %vm2914_vm8, %v1396_v25, 0.0  ;;  %1434 = vrot.lane.b32.xlu1 %v1427_v18, %s2801_s1 }
 0x27a   :  { %v1405_v3 = vpack.c.bf16 %v1402_v57, %v1401_v32  ;;  %v1371_v11 = vpop.f32.mrf.mxu3  ;;  %v1413_v57 = vld [vmem:[%s3572_s6] sm:$0xf] }
 0x27c   :  { %1408 = vst [vmem:[#allocation3 + $0x14] sm:$0xff] %v1405_v3  ;;  %v2065_v6 = vunpack.c.l.b16 %v1405_v3  ;;  %v2066_v22 = vunpack.c.h.b16 %v1405_v3 }
 0x27e   :  { %v3298_v33 = vpack.c.b16 %v2065_v6, %v2065_v6  ;;  %v3302_v30 = vpack.c.b16 %v2066_v22, %v2066_v22 }
 0x281   :  { %1440 = vrot.lane.b32.xlu1 %v1430_v13, %s2801_s1 }
 0x283   :  { %v1411_v15 = vld [vmem:[#allocation3 + $0x10] sm:$0xff]  ;;  %v1412_v47 = vld [vmem:[#allocation3 + $0x18] sm:$0xff]  }
 0x284   :  { %v1425_v24 = vunpack.c.h.b16 %v1411_v15  ;;  %v1424_v16 = vunpack.c.l.b16 %v1411_v15  ;;  %v1426_v17 = vunpack.c.l.b16 %v1412_v47  ;;  %v2067_v42 = vunpack.c.h.b16 %v1412_v47 }
 0x286   :  { %v1432_v21 = vpack.c.b16 %v1425_v24, %v1425_v24  ;;  %v1431_v56 = vpack.c.b16 %v1424_v16, %v1424_v16  ;;  %v1433_v23 = vpack.c.b16 %v1426_v17, %v1426_v17  ;;  %v3310_v44 = vpack.c.b16 %v2067_v42, %v2067_v42 }
 0x288   :  { %1444 = vrot.lane.b32.xlu0 %v1432_v21, %s2801_s1  ;;  %1442 = vrot.lane.b32.xlu2 %v1431_v56, %s2801_s1 }
 0x289   :  { %1446 = vrot.lane.b32.xlu1 %v1433_v23, %s2801_s1 }
 0x290   :  { %1555 = vrot.lane.b32.xlu0 %v1428_v1, %s2802_s13  ;;  %1553 = vrot.lane.b32.xlu2 %v1427_v18, %s2802_s13 }
 0x291   :  { %1557 = vrot.lane.b32.xlu1 %v1429_v10, %s2802_s13 }
 0x298   :  { %1561 = vrot.lane.b32.xlu0 %v1431_v56, %s2802_s13  ;;  %1559 = vrot.lane.b32.xlu2 %v1430_v13, %s2802_s13 }
 0x299   :  { %1563 = vrot.lane.b32.xlu1 %v1432_v21, %s2802_s13 }
 0x2a0   :  { %1674 = vrot.lane.b32.xlu0 %v1427_v18, %s2803_s14  ;;  %1565 = vrot.lane.b32.xlu2 %v1433_v23, %s2802_s13 }
 0x2a1   :  { %1676 = vrot.lane.b32.xlu1 %v1428_v1, %s2803_s14 }
 0x2a8   :  { %1680 = vrot.lane.b32.xlu0 %v1430_v13, %s2803_s14  ;;  %1678 = vrot.lane.b32.xlu2 %v1429_v10, %s2803_s14 }
 0x2a9   :  { %1682 = vrot.lane.b32.xlu1 %v1431_v56, %s2803_s14 }
 0x2b0   :  { %1686 = vrot.lane.b32.xlu0 %v1433_v23, %s2803_s14  ;;  %1684 = vrot.lane.b32.xlu2 %v1432_v21, %s2803_s14 }
 0x2b1   :  { %1801 = vrot.lane.b32.xlu1 %v1427_v18, %s2804_s15 }
 0x2b8   :  { %1805 = vrot.lane.b32.xlu0 %v1429_v10, %s2804_s15  ;;  %1803 = vrot.lane.b32.xlu2 %v1428_v1, %s2804_s15 }
 0x2b9   :  { %1807 = vrot.lane.b32.xlu1 %v1430_v13, %s2804_s15 }
 0x2c0   :  { %1811 = vrot.lane.b32.xlu0 %v1432_v21, %s2804_s15  ;;  %1809 = vrot.lane.b32.xlu2 %v1431_v56, %s2804_s15  ;;  %v38_v21 = vld [vmem:[%s3569_s3 + $0x8] sm:$0xff] }
 0x2c1   :  { %1813 = vrot.lane.b32.xlu1 %v1433_v23, %s2804_s15 }
 0x2c8   :  { %2077 = vrot.lane.b32.xlu0 %v3285_v36, %s2805_s16  ;;  %2075 = vrot.lane.b32.xlu2 %v3287_v37, %s2805_s16 }
 0x2c9   :  { %2079 = vrot.lane.b32.xlu1 %v3289_v19, %s2805_s16 }
 0x2d0   :  { %2083 = vrot.lane.b32.xlu0 %v3298_v33, %s2805_s16  ;;  %2081 = vrot.lane.b32.xlu2 %v3300_v40, %s2805_s16 }
 0x2d1   :  { %2085 = vrot.lane.b32.xlu1 %v3302_v30, %s2805_s16 }
 0x2d2   :  { %v1437_v46 = vpop.permute.xlu2 %1436 }
 0x2d8   :  { %2202 = vrot.lane.b32.xlu0 %v3287_v37, %s2806_s17  ;;  %2087 = vrot.lane.b32.xlu2 %v3310_v44, %s2805_s16 }
 0x2d9   :  { %2204 = vrot.lane.b32.xlu1 %v3285_v36, %s2806_s17 }
 0x2e0   :  { %2208 = vrot.lane.b32.xlu0 %v3300_v40, %s2806_s17  ;;  %2206 = vrot.lane.b32.xlu2 %v3289_v19, %s2806_s17 }
 0x2e1   :  { %2210 = vrot.lane.b32.xlu1 %v3298_v33, %s2806_s17 }
 0x2e2   :  { %v1443_v48 = vpop.permute.xlu2 %1442 }
 0x2e8   :  { %2214 = vrot.lane.b32.xlu0 %v3310_v44, %s2806_s17  ;;  %2212 = vrot.lane.b32.xlu2 %v3302_v30, %s2806_s17 }
 0x2e9   :  { %2329 = vrot.lane.b32.xlu1 %v3287_v37, %s2807_s18 }
 0x2ea   :  { %v1439_v14 = vpop.permute.xlu0 %1438  ;;  %v1554_v43 = vpop.permute.xlu2 %1553 }
 0x2eb   :  { %v1449_v45 = vsel %vm236_vm9, %v1437_v46, %v1439_v14  ;;  %v1435_v49 = vpop.permute.xlu1 %1434 }
 0x2ec   :  { %v1461_v50 = vsel %vm247_vm10, %v1449_v45, 0  ;;  %v1448_v53 = vsel %vm236_vm9, %v1435_v49, %v1437_v46 }
 0x2ed   :  { %v1458_v39 = vsel %vm247_vm10, %v1448_v53, 0  ;;  %1495 = vmatpush.bf16.msrb.mxu1 %v1461_v50  ;;  %v2712_v50 = vld [vmem:[%s3572_s6 + $0x8] sm:$0xf] }
 0x2ee   :  { %1482 = vmatpush.bf16.msrb.mxu0 %v1458_v39 }
 0x2f0   :  { %2701 = vmatmul.msk.bf16.vlgmr.msrb.gmra.mxu1 %vm243_vm11, %v2699_v54  ;;  %2333 = vrot.lane.b32.xlu0 %v3289_v19, %s2807_s18 }
 0x2f1   :  { %2331 = vrot.lane.b32.xlu2 %v3285_v36, %s2807_s18  ;;  %2335 = vrot.lane.b32.xlu1 %v3300_v40, %s2807_s18 }
 0x2f2   :  { %2700 = vmatmul.msk.bf16.vlgmr.msrb.gmra.mxu0 %vm243_vm11, %v2699_v54  ;;  %v1560_v4 = vpop.permute.xlu2 %1559 }
 0x2f3   :  { %v1441_v58 = vpop.permute.xlu1 %1440 }
 0x2f4   :  { %v1450_v59 = vsel %vm236_vm9, %v1439_v14, %v1441_v58  ;;  %v1451_v60 = vsel %vm236_vm9, %v1441_v58, %v1443_v48 }
 0x2f5   :  { %v1464_v62 = vsel %vm247_vm10, %v1450_v59, 0  ;;  %v1467_v0 = vsel %vm247_vm10, %v1451_v60, 0 }
 0x2f6   :  { %1508 = vmatpush.bf16.msrb.mxu2 %v1464_v62  ;;  %1521 = vmatpush.bf16.msrb.mxu3 %v1467_v0 }
 0x2f8   :  { %2339 = vrot.lane.b32.xlu0 %v3302_v30, %s2807_s18 }
 0x2f9   :  { %2337 = vrot.lane.b32.xlu2 %v3298_v33, %s2807_s18  ;;  %2341 = vrot.lane.b32.xlu1 %v3310_v44, %s2807_s18 }
 0x2fa   :  { %2702 = vmatmul.msk.bf16.vlgmr.msrb.gmra.mxu2 %vm243_vm11, %v2699_v54  ;;  %2703 = vmatmul.msk.bf16.vlgmr.msrb.gmra.mxu3 %vm243_vm11, %v2699_v54  ;;  %v1445_v2 = vpop.permute.xlu0 %1444  ;;  %v1566_v8 = vpop.permute.xlu2 %1565 }
 0x2fb   :  { %v1452_v29 = vsel %vm236_vm9, %v1443_v48, %v1445_v2  ;;  %v1447_v52 = vpop.permute.xlu1 %1446 }
 0x2fc   :  { %v1470_v26 = vsel %vm247_vm10, %v1452_v29, 0  ;;  %v1453_v5 = vsel %vm236_vm9, %v1445_v2, %v1447_v52 }
 0x2fd   :  { %v1473_v7 = vsel %vm247_vm10, %v1453_v5, 0  ;;  %1534 = vmatpush.bf16.msra.mxu0 %v1470_v26 }
 0x2fe   :  { %1547 = vmatpush.bf16.msra.mxu1 %v1473_v7 }
 0x300   :  { %2458 = vrot.lane.b32.xlu0 %v3285_v36, %s2808_s21 }
 0x301   :  { %2456 = vrot.lane.b32.xlu2 %v3287_v37, %s2808_s21  ;;  %2460 = vrot.lane.b32.xlu1 %v3289_v19, %s2808_s21 }
 0x302   :  { %2704 = vmatmul.msk.bf16.vlgmr.msra.gmra.mxu0 %vm243_vm11, %v2699_v54  ;;  %2705 = vmatmul.msk.bf16.vlgmr.msra.gmra.mxu1 %vm243_vm11, %v2699_v54  ;;  %v1556_v27 = vpop.permute.xlu0 %1555  ;;  %v1679_v24 = vpop.permute.xlu2 %1678 }
 0x303   :  { %v1567_v20 = vsel %vm358_vm12, %v1554_v43, %v1556_v27  ;;  %v1558_v9 = vpop.permute.xlu1 %1557 }
 0x304   :  { %v1577_v10 = vsel %vm247_vm10, %v1567_v20, 0  ;;  %v1568_v1 = vsel %vm358_vm12, %v1556_v27, %v1558_v9  ;;  %v1569_v18 = vsel %vm358_vm12, %v1558_v9, %v1560_v4  ;;  %v1950_v27 = vsel %vm247_vm10, %v3287_v37, 0  ;;  %v2719_v37 = vld [vmem:[%s3572_s6 + $0xc] sm:$0xf] }
 0x305   :  { %v1580_v25 = vsel %vm247_vm10, %v1568_v1, 0  ;;  %v1583_v32 = vsel %vm247_vm10, %v1569_v18, 0  ;;  %1601 = vmatpush.bf16.msra.mxu2 %v1577_v10 }
 0x306   :  { %1614 = vmatpush.bf16.msra.mxu3 %v1580_v25  ;;  %1627 = vmatpush.bf16.msrb.mxu0 %v1583_v32  ;;  %v1959_v32 = vsel %vm247_vm10, %v3300_v40, 0 }
 0x308   :  { %2464 = vrot.lane.b32.xlu0 %v3298_v33, %s2808_s21 }
 0x309   :  { %2462 = vrot.lane.b32.xlu2 %v3300_v40, %s2808_s21  ;;  %2466 = vrot.lane.b32.xlu1 %v3302_v30, %s2808_s21 }
 0x30a   :  { %2706 = vmatmul.msk.bf16.vlgmr.msra.gmra.mxu2 %vm243_vm11, %v1413_v57  ;;  %2707 = vmatmul.msk.bf16.vlgmr.msra.gmra.mxu3 %vm243_vm11, %v1413_v57  ;;  %v1562_v3 = vpop.permute.xlu0 %1561  ;;  %v1685_v12 = vpop.permute.xlu2 %1684 }
 0x30b   :  { %v1570_v11 = vsel %vm358_vm12, %v1560_v4, %v1562_v3  ;;  %v1564_v28 = vpop.permute.xlu1 %1563 }
 0x30c   :  { %v1586_v13 = vsel %vm247_vm10, %v1570_v11, 0  ;;  %v1571_v15 = vsel %vm358_vm12, %v1562_v3, %v1564_v28  ;;  %v1572_v47 = vsel %vm358_vm12, %v1564_v28, %v1566_v8  ;;  %v1953_v8 = vsel %vm247_vm10, %v3285_v36, 0 }
 0x30d   :  { %v1589_v16 = vsel %vm247_vm10, %v1571_v15, 0  ;;  %v1592_v17 = vsel %vm247_vm10, %v1572_v47, 0  ;;  %1640 = vmatpush.bf16.msrb.mxu1 %v1586_v13  ;;  %v1956_v36 = vsel %vm247_vm10, %v3289_v19, 0  ;;  %v1962_v11 = vsel %vm247_vm10, %v3298_v33, 0 }
 0x30e   :  { %1653 = vmatpush.bf16.msrb.mxu2 %v1589_v16  ;;  %1666 = vmatpush.bf16.msrb.mxu3 %v1592_v17  ;;  %v1965_v28 = vsel %vm247_vm10, %v3302_v30, 0  ;;  %v2726_v17 = vld [vmem:[%s3572_s6 + $0x10] sm:$0xf] }
 0x310   :  { %46 = vperm.xlu0 %2772, %v38_v21  }
 0x311   :  { %2468 = vrot.lane.b32.xlu2 %v3310_v44, %s2808_s21 }
 0x312   :  { %2708 = vmatmul.msk.bf16.vlgmr.msrb.gmra.mxu0 %vm243_vm11, %v1413_v57  ;;  %2709 = vmatmul.msk.bf16.vlgmr.msrb.gmra.mxu1 %vm243_vm11, %v1413_v57  ;;  %v1675_v56 = vpop.permute.xlu0 %1674  ;;  %v1804_v53 = vpop.permute.xlu2 %1803 }
 0x313   :  { %v1677_v23 = vpop.permute.xlu1 %1676 }
 0x314   :  { %v1688_v61 = vsel %vm480_vm13, %v1675_v56, %v1677_v23  ;;  %v1689_v31 = vsel %vm480_vm13, %v1677_v23, %v1679_v24 }
 0x315   :  { %v1698_v35 = vsel %vm247_vm10, %v1688_v61, 0  ;;  %v1701_v6 = vsel %vm247_vm10, %v1689_v31, 0 }
 0x316   :  { %1722 = vmatpush.bf16.msra.mxu0 %v1698_v35  ;;  %1735 = vmatpush.bf16.msra.mxu1 %v1701_v6 }
 0x31a   :  { %2710 = vmatmul.msk.bf16.vlgmr.msrb.gmra.mxu2 %vm243_vm11, %v1413_v57  ;;  %2711 = vmatmul.msk.bf16.vlgmr.msrb.gmra.mxu3 %vm243_vm11, %v1413_v57  ;;  %v1681_v22 = vpop.permute.xlu0 %1680  ;;  %v1810_v0 = vpop.permute.xlu2 %1809 }
 0x31b   :  { %v1690_v42 = vsel %vm480_vm13, %v1679_v24, %v1681_v22  ;;  %v1683_v44 = vpop.permute.xlu1 %1682 }
 0x31c   :  { %v1704_v46 = vsel %vm247_vm10, %v1690_v42, 0  ;;  %v1691_v48 = vsel %vm480_vm13, %v1681_v22, %v1683_v44  ;;  %v1692_v14 = vsel %vm480_vm13, %v1683_v44, %v1685_v12 }
 0x31d   :  { %v1707_v45 = vsel %vm247_vm10, %v1691_v48, 0  ;;  %v1710_v49 = vsel %vm247_vm10, %v1692_v14, 0  ;;  %1748 = vmatpush.bf16.msra.mxu2 %v1704_v46 }
 0x31e   :  { %1761 = vmatpush.bf16.msra.mxu3 %v1707_v45  ;;  %1774 = vmatpush.bf16.msrb.mxu0 %v1710_v49 }
 0x322   :  { %2713 = vmatmul.msk.bf16.vlgmr.msra.gmra.mxu0 %vm243_vm11, %v2712_v50  ;;  %2714 = vmatmul.msk.bf16.vlgmr.msra.gmra.mxu1 %vm243_vm11, %v2712_v50  ;;  %v1687_v39 = vpop.permute.xlu0 %1686  ;;  %v2076_v57 = vpop.permute.xlu2 %2075 }
 0x323   :  { %v1693_v54 = vsel %vm480_vm13, %v1685_v12, %v1687_v39  ;;  %v1802_v43 = vpop.permute.xlu1 %1801 }
 0x324   :  { %v1713_v58 = vsel %vm247_vm10, %v1693_v54, 0  ;;  %v1815_v59 = vsel %vm608_vm14, %v1802_v43, %v1804_v53  ;;  %v2733_v54 = vld [vmem:[%s3572_s6 + $0x14] sm:$0xf] }
 0x325   :  { %v1825_v60 = vsel %vm247_vm10, %v1815_v59, 0  ;;  %1787 = vmatpush.bf16.msrb.mxu1 %v1713_v58 }
 0x326   :  { %1849 = vmatpush.bf16.msrb.mxu2 %v1825_v60 }
 0x32a   :  { %2715 = vmatmul.msk.bf16.vlgmr.msra.gmra.mxu2 %vm243_vm11, %v2712_v50  ;;  %2716 = vmatmul.msk.bf16.vlgmr.msra.gmra.mxu3 %vm243_vm11, %v2712_v50  ;;  %v1806_v62 = vpop.permute.xlu0 %1805  ;;  %v2082_v15 = vpop.permute.xlu2 %2081 }
 0x32b   :  { %v1816_v4 = vsel %vm608_vm14, %v1804_v53, %v1806_v62  ;;  %v1808_v2 = vpop.permute.xlu1 %1807 }
 0x32c   :  { %v1828_v29 = vsel %vm247_vm10, %v1816_v4, 0  ;;  %v1817_v52 = vsel %vm608_vm14, %v1806_v62, %v1808_v2  ;;  %v1818_v26 = vsel %vm608_vm14, %v1808_v2, %v1810_v0 }
 0x32d   :  { %v1831_v5 = vsel %vm247_vm10, %v1817_v52, 0  ;;  %v1834_v7 = vsel %vm247_vm10, %v1818_v26, 0  ;;  %1862 = vmatpush.bf16.msrb.mxu3 %v1828_v29 }
 0x32e   :  { %1875 = vmatpush.bf16.msra.mxu0 %v1831_v5  ;;  %1888 = vmatpush.bf16.msra.mxu1 %v1834_v7 }
 0x332   :  { %2717 = vmatmul.msk.bf16.vlgmr.msrb.gmra.mxu0 %vm243_vm11, %v2712_v50  ;;  %2718 = vmatmul.msk.bf16.vlgmr.msrb.gmra.mxu1 %vm243_vm11, %v2712_v50  ;;  %v1812_v20 = vpop.permute.xlu0 %1811  ;;  %v2088_v61 = vpop.permute.xlu2 %2087 }
 0x333   :  { %1974 = vmatpush.bf16.msrb.mxu0 %v1950_v27  ;;  %1987 = vmatpush.bf16.msrb.mxu1 %v1953_v8  ;;  %v1819_v9 = vsel %vm608_vm14, %v1810_v0, %v1812_v20  ;;  %v1814_v10 = vpop.permute.xlu1 %1813 }
 0x334   :  { %v1837_v1 = vsel %vm247_vm10, %v1819_v9, 0  ;;  %v1820_v18 = vsel %vm608_vm14, %v1812_v20, %v1814_v10 }
 0x335   :  { %v1840_v25 = vsel %vm247_vm10, %v1820_v18, 0  ;;  %1901 = vmatpush.bf16.msra.mxu2 %v1837_v1 }
 0x336   :  { %1914 = vmatpush.bf16.msra.mxu3 %v1840_v25 }
 0x33a   :  { %2720 = vmatmul.msk.bf16.vlgmr.msrb.gmra.mxu2 %vm243_vm11, %v2719_v37  ;;  %2721 = vmatmul.msk.bf16.vlgmr.msrb.gmra.mxu3 %vm243_vm11, %v2719_v37  ;;  %v2078_v3 = vpop.permute.xlu0 %2077  ;;  %v2207_v44 = vpop.permute.xlu2 %2206 }
 0x33b   :  { %2000 = vmatpush.bf16.msrb.mxu2 %v1956_v36  ;;  %2013 = vmatpush.bf16.msrb.mxu3 %v1959_v32  ;;  %v2080_v19 = vpop.permute.xlu1 %2079  ;;  %v2089_v13 = vsel %vm883_vm15, %v2076_v57, %v2078_v3 }
 0x33c   :  { %v2090_v40 = vsel %vm883_vm15, %v2078_v3, %v2080_v19  ;;  %v2099_v47 = vsel %vm247_vm10, %v2089_v13, 0  ;;  %v2091_v30 = vsel %vm883_vm15, %v2080_v19, %v2082_v15 }
 0x33d   :  { %v2102_v24 = vsel %vm247_vm10, %v2090_v40, 0  ;;  %v2105_v56 = vsel %vm247_vm10, %v2091_v30, 0 }
 0x342   :  { %2722 = vmatmul.msk.bf16.vlgmr.msra.gmra.mxu0 %vm243_vm11, %v2719_v37  ;;  %2723 = vmatmul.msk.bf16.vlgmr.msra.gmra.mxu1 %vm243_vm11, %v2719_v37  ;;  %v2084_v33 = vpop.permute.xlu0 %2083  ;;  %v2213_v43 = vpop.permute.xlu2 %2212 }
 0x343   :  { %2026 = vmatpush.bf16.msra.mxu0 %v1962_v11  ;;  %2039 = vmatpush.bf16.msra.mxu1 %v1965_v28  ;;  %v2092_v16 = vsel %vm883_vm15, %v2082_v15, %v2084_v33  ;;  %v2086_v21 = vpop.permute.xlu1 %2085  ;;  %v2740_v28 = vld [vmem:[%s3572_s6 + $0x18] sm:$0xf] }
 0x344   :  { %v2108_v23 = vsel %vm247_vm10, %v2092_v16, 0  ;;  %v2093_v35 = vsel %vm883_vm15, %v2084_v33, %v2086_v21  ;;  %v2094_v6 = vsel %vm883_vm15, %v2086_v21, %v2088_v61 }
 0x345   :  { %v2111_v12 = vsel %vm247_vm10, %v2093_v35, 0  ;;  %v2114_v22 = vsel %vm247_vm10, %v2094_v6, 0 }
 0x34a   :  { %2724 = vmatmul.msk.bf16.vlgmr.msra.gmra.mxu2 %vm243_vm11, %v2719_v37  ;;  %2725 = vmatmul.msk.bf16.vlgmr.msra.gmra.mxu3 %vm243_vm11, %v2719_v37  ;;  %v2203_v31 = vpop.permute.xlu0 %2202 }
 0x34b   :  { %2123 = vmatpush.bf16.msra.mxu2 %v2099_v47  ;;  %2136 = vmatpush.bf16.msra.mxu3 %v2102_v24  ;;  %v2205_v42 = vpop.permute.xlu1 %2204  ;;  %v2332_v5 = vpop.permute.xlu2 %2331 }
 0x34c   :  { %v2216_v46 = vsel %vm1011_vm0, %v2203_v31, %v2205_v42  ;;  %v2217_v48 = vsel %vm1011_vm0, %v2205_v42, %v2207_v44 }
 0x34d   :  { %v2226_v45 = vsel %vm247_vm10, %v2216_v46, 0  ;;  %v2229_v49 = vsel %vm247_vm10, %v2217_v48, 0 }
 0x352   :  { %2727 = vmatmul.msk.bf16.vlgmr.msrb.gmra.mxu0 %vm243_vm11, %v2726_v17  ;;  %2728 = vmatmul.msk.bf16.vlgmr.msrb.gmra.mxu1 %vm243_vm11, %v2726_v17  ;;  %v2209_v14 = vpop.permute.xlu0 %2208 }
 0x353   :  { %2149 = vmatpush.bf16.msrb.mxu0 %v2105_v56  ;;  %2162 = vmatpush.bf16.msrb.mxu1 %v2108_v23  ;;  %v2211_v50 = vpop.permute.xlu1 %2210  ;;  %v2218_v53 = vsel %vm1011_vm0, %v2207_v44, %v2209_v14  ;;  %v2338_v36 = vpop.permute.xlu2 %2337 }
 0x354   :  { %v2219_v39 = vsel %vm1011_vm0, %v2209_v14, %v2211_v50  ;;  %v2232_v58 = vsel %vm247_vm10, %v2218_v53, 0  ;;  %v2220_v4 = vsel %vm1011_vm0, %v2211_v50, %v2213_v43 }
 0x355   :  { %v2235_v59 = vsel %vm247_vm10, %v2219_v39, 0  ;;  %v2238_v52 = vsel %vm247_vm10, %v2220_v4, 0 }
 0x35a   :  { %2729 = vmatmul.msk.bf16.vlgmr.msrb.gmra.mxu2 %vm243_vm11, %v2726_v17  ;;  %2730 = vmatmul.msk.bf16.vlgmr.msrb.gmra.mxu3 %vm243_vm11, %v2726_v17  ;;  %v2215_v60 = vpop.permute.xlu0 %2214 }
 0x35b   :  { %2175 = vmatpush.bf16.msrb.mxu2 %v2111_v12  ;;  %2188 = vmatpush.bf16.msrb.mxu3 %v2114_v22  ;;  %v2330_v0 = vpop.permute.xlu1 %2329  ;;  %v2221_v2 = vsel %vm1011_vm0, %v2213_v43, %v2215_v60  ;;  %v2457_v21 = vpop.permute.xlu2 %2456 }
 0x35c   :  { %v2241_v26 = vsel %vm247_vm10, %v2221_v2, 0  ;;  %v2343_v8 = vsel %vm1139_vm1, %v2330_v0, %v2332_v5  ;;  %v2747_v0 = vld [vmem:[%s3572_s6 + $0x1c] sm:$0xf] }
 0x35d   :  { %v2353_v1 = vsel %vm247_vm10, %v2343_v8, 0  ;;  %v2581_v8 = vld [vmem:[%s3573_s7] sm:$0xff] }
 0x35e   :  { %2584 = vperm.xlu1 %2773, %v2581_v8  }
 0x362   :  { %2731 = vmatmul.msk.bf16.vlgmr.msra.gmra.mxu0 %vm243_vm11, %v2726_v17  ;;  %2732 = vmatmul.msk.bf16.vlgmr.msra.gmra.mxu1 %vm243_vm11, %v2726_v17  ;;  %v2334_v7 = vpop.permute.xlu0 %2333 }
 0x363   :  { %2250 = vmatpush.bf16.msra.mxu0 %v2226_v45  ;;  %2263 = vmatpush.bf16.msra.mxu1 %v2229_v49  ;;  %v2344_v20 = vsel %vm1139_vm1, %v2332_v5, %v2334_v7  ;;  %v2336_v10 = vpop.permute.xlu1 %2335  ;;  %v2463_v53 = vpop.permute.xlu2 %2462 }
 0x364   :  { %v2356_v18 = vsel %vm247_vm10, %v2344_v20, 0  ;;  %v2345_v32 = vsel %vm1139_vm1, %v2334_v7, %v2336_v10  ;;  %v2346_v57 = vsel %vm1139_vm1, %v2336_v10, %v2338_v36 }
 0x365   :  { %v2359_v13 = vsel %vm247_vm10, %v2345_v32, 0  ;;  %v2362_v40 = vsel %vm247_vm10, %v2346_v57, 0 }
 0x36a   :  { %2734 = vmatmul.msk.bf16.vlgmr.msra.gmra.mxu2 %vm243_vm11, %v2733_v54  ;;  %2735 = vmatmul.msk.bf16.vlgmr.msra.gmra.mxu3 %vm243_vm11, %v2733_v54  ;;  %v2340_v19 = vpop.permute.xlu0 %2339 }
 0x36b   :  { %2276 = vmatpush.bf16.msra.mxu2 %v2232_v58  ;;  %2289 = vmatpush.bf16.msra.mxu3 %v2235_v59  ;;  %v2342_v15 = vpop.permute.xlu1 %2341  ;;  %v2347_v33 = vsel %vm1139_vm1, %v2338_v36, %v2340_v19  ;;  %v2469_v5 = vpop.permute.xlu2 %2468 }
 0x36c   :  { %v2348_v30 = vsel %vm1139_vm1, %v2340_v19, %v2342_v15  ;;  %v2365_v56 = vsel %vm247_vm10, %v2347_v33, 0 }
 0x36d   :  { %v1497_v62 = vpop.f32.mrf.mxu1  ;;  %v2368_v23 = vsel %vm247_vm10, %v2348_v30, 0 }
 0x36f   :  { %v1484_v29 = vpop.f32.mrf.mxu0 }
 0x372   :  { %2736 = vmatmul.msk.bf16.vlgmr.msrb.gmra.mxu0 %vm243_vm11, %v2733_v54  ;;  %2737 = vmatmul.msk.bf16.vlgmr.msrb.gmra.mxu1 %vm243_vm11, %v2733_v54  ;;  %v2459_v61 = vpop.permute.xlu0 %2458 }
 0x373   :  { %2302 = vmatpush.bf16.msrb.mxu0 %v2238_v52  ;;  %2315 = vmatpush.bf16.msrb.mxu1 %v2241_v26  ;;  %v2461_v31 = vpop.permute.xlu1 %2460  ;;  %v2470_v42 = vsel %vm1267_vm2, %v2457_v21, %v2459_v61 }
 0x374   :  { %v2471_v44 = vsel %vm1267_vm2, %v2459_v61, %v2461_v31  ;;  %v2480_v49 = vsel %vm247_vm10, %v2470_v42, 0  ;;  %v2472_v58 = vsel %vm1267_vm2, %v2461_v31, %v2463_v53 }
 0x375   :  { %v1499_v27 = vpop.f32.mrf.mxu1  ;;  %v2483_v50 = vsel %vm247_vm10, %v2471_v44, 0  ;;  %v2486_v4 = vsel %vm247_vm10, %v2472_v58, 0 }
 0x377   :  { %v1486_v9 = vpop.f32.mrf.mxu0 }
 0x37a   :  { %2738 = vmatmul.msk.bf16.vlgmr.msrb.gmra.mxu2 %vm243_vm11, %v2733_v54  ;;  %2739 = vmatmul.msk.bf16.vlgmr.msrb.gmra.mxu3 %vm243_vm11, %v2733_v54  ;;  %v2465_v39 = vpop.permute.xlu0 %2464 }
 0x37b   :  { %2377 = vmatpush.bf16.msrb.mxu2 %v2353_v1  ;;  %2390 = vmatpush.bf16.msrb.mxu3 %v2356_v18  ;;  %v2473_v59 = vsel %vm1267_vm2, %v2463_v53, %v2465_v39 }
 0x37c   :  { %v2489_v2 = vsel %vm247_vm10, %v2473_v59, 0 }
 0x37d   :  { %v1510_v25 = vpop.f32.mrf.mxu2  ;;  %v1523_v37 = vpop.f32.mrf.mxu3 }
 0x37f   :  { %v1536_v3 = vpop.f32.mrf.mxu0  ;;  %v1549_v11 = vpop.f32.mrf.mxu1 }
 0x382   :  { %2741 = vmatmul.msk.bf16.vlgmr.msra.gmra.mxu0 %vm243_vm11, %v2740_v28  ;;  %2742 = vmatmul.msk.bf16.vlgmr.msra.gmra.mxu1 %vm243_vm11, %v2740_v28 }
 0x383   :  { %2403 = vmatpush.bf16.msra.mxu0 %v2359_v13  ;;  %2416 = vmatpush.bf16.msra.mxu1 %v2362_v40 }
 0x385   :  { %v1512_v47 = vpop.f32.mrf.mxu2  ;;  %v1525_v24 = vpop.f32.mrf.mxu3 }
 0x386   :  { %v2754_v24 = vld [vmem:[%s3572_s6 + $0x20] sm:$0xf]  ;;  %s2809_s6 = smov [#allocation4]  }
 0x387   :  { %v1538_v16 = vpop.f32.mrf.mxu0  ;;  %v1551_v17 = vpop.f32.mrf.mxu1  ;;  %s2616_s10 = sshll.u32 %s2809_s6, 4  ;;  %s2617_s10 = int_to_ptr.vmem [resolvable:$true] %s2616_s10 }
 0x38a   :  { %2743 = vmatmul.msk.bf16.vlgmr.msra.gmra.mxu2 %vm243_vm11, %v2740_v28  ;;  %2744 = vmatmul.msk.bf16.vlgmr.msra.gmra.mxu3 %vm243_vm11, %v2740_v28 }
 0x38b   :  { %2429 = vmatpush.bf16.msra.mxu2 %v2365_v56  ;;  %2442 = vmatpush.bf16.msra.mxu3 %v2368_v23 }
 0x38d   :  { %v1603_v35 = vpop.f32.mrf.mxu2  ;;  %v1616_v6 = vpop.f32.mrf.mxu3 }
 0x38e   :  { %v1604_v12 = vadd.f32 %v1603_v35, %v1484_v29  ;;  %v1617_v22 = vadd.f32 %v1616_v6, %v1497_v62  ;;  %v2467_v29 = vpop.permute.xlu1 %2466 }
 0x38f   :  { %v1629_v46 = vpop.f32.mrf.mxu0  ;;  %v1642_v48 = vpop.f32.mrf.mxu1  ;;  %v2474_v20 = vsel %vm1267_vm2, %v2465_v39, %v2467_v29  ;;  %v2475_v9 = vsel %vm1267_vm2, %v2467_v29, %v2469_v5 }
 0x390   :  { %v1630_v14 = vadd.f32 %v1629_v46, %v1510_v25  ;;  %v1643_v45 = vadd.f32 %v1642_v48, %v1523_v37  ;;  %v2492_v37 = vsel %vm247_vm10, %v2474_v20, 0  ;;  %v2495_v36 = vsel %vm247_vm10, %v2475_v9, 0 }
 0x392   :  { %2745 = vmatmul.msk.bf16.vlgmr.msrb.gmra.mxu0 %vm243_vm11, %v2740_v28  ;;  %2746 = vmatmul.msk.bf16.vlgmr.msrb.gmra.mxu1 %vm243_vm11, %v2740_v28 }
 0x393   :  { %2504 = vmatpush.bf16.msrb.mxu0 %v2480_v49  ;;  %2517 = vmatpush.bf16.msrb.mxu1 %v2483_v50 }
 0x395   :  { %v1605_v54 = vpop.f32.mrf.mxu2  ;;  %v1618_v43 = vpop.f32.mrf.mxu3 }
 0x397   :  { %v1631_v60 = vpop.f32.mrf.mxu0  ;;  %v1644_v62 = vpop.f32.mrf.mxu1 }
 0x39a   :  { %2748 = vmatmul.msk.bf16.vlgmr.msrb.gmra.mxu2 %vm243_vm11, %v2747_v0  ;;  %2749 = vmatmul.msk.bf16.vlgmr.msrb.gmra.mxu3 %vm243_vm11, %v2747_v0 }
 0x39b   :  { %2530 = vmatpush.bf16.msrb.mxu2 %v2486_v4  ;;  %2543 = vmatpush.bf16.msrb.mxu3 %v2489_v2 }
 0x39d   :  { %v1655_v52 = vpop.f32.mrf.mxu2  ;;  %v1668_v26 = vpop.f32.mrf.mxu3 }
 0x39e   :  { %v1656_v7 = vadd.f32 %v1655_v52, %v1536_v3  ;;  %v1669_v27 = vadd.f32 %v1668_v26, %v1549_v11 }
 0x39f   :  { %v1724_v10 = vpop.f32.mrf.mxu0  ;;  %v1737_v1 = vpop.f32.mrf.mxu1 }
 0x3a0   :  { %v1793_v18 = vadd.f32 %v1724_v10, %v1604_v12  ;;  %v1794_v25 = vadd.f32 %v1737_v1, %v1617_v22 }
 0x3a2   :  { %2750 = vmatmul.msk.bf16.vlgmr.msra.gmra.mxu0 %vm243_vm11, %v2747_v0  ;;  %2751 = vmatmul.msk.bf16.vlgmr.msra.gmra.mxu1 %vm243_vm11, %v2747_v0 }
 0x3a3   :  { %2556 = vmatpush.bf16.msra.mxu0 %v2492_v37  ;;  %2569 = vmatpush.bf16.msra.mxu1 %v2495_v36 }
 0x3a5   :  { %v1657_v32 = vpop.f32.mrf.mxu2  ;;  %v1670_v57 = vpop.f32.mrf.mxu3 }
 0x3a7   :  { %v1726_v3 = vpop.f32.mrf.mxu0  ;;  %v1739_v11 = vpop.f32.mrf.mxu1 }
 0x3aa   :  { %2752 = vmatmul.msk.bf16.vlgmr.msra.gmra.mxu2 %vm243_vm11, %v2747_v0  ;;  %2753 = vmatmul.msk.bf16.vlgmr.msra.gmra.mxu3 %vm243_vm11, %v2747_v0 }
 0x3ad   :  { %v1750_v28 = vpop.f32.mrf.mxu2  ;;  %v1763_v19 = vpop.f32.mrf.mxu3 }
 0x3ae   :  { %v1795_v13 = vadd.f32 %v1750_v28, %v1630_v14  ;;  %v1796_v40 = vadd.f32 %v1763_v19, %v1643_v45 }
 0x3af   :  { %v1776_v15 = vpop.f32.mrf.mxu0  ;;  %v1789_v47 = vpop.f32.mrf.mxu1 }
 0x3b0   :  { %v1797_v33 = vadd.f32 %v1776_v15, %v1656_v7  ;;  %v1798_v30 = vadd.f32 %v1789_v47, %v1669_v27 }
 0x3b2   :  { %2755 = vmatmul.msk.bf16.vlgmr.msrb.gmra.mxu0 %vm243_vm11, %v2754_v24  ;;  %2756 = vmatmul.msk.bf16.vlgmr.msrb.gmra.mxu1 %vm243_vm11, %v2754_v24 }
 0x3b5   :  { %v1752_v16 = vpop.f32.mrf.mxu2  ;;  %v1765_v17 = vpop.f32.mrf.mxu3 }
 0x3b7   :  { %v1778_v21 = vpop.f32.mrf.mxu0  ;;  %v1791_v56 = vpop.f32.mrf.mxu1 }
 0x3ba   :  { %2757 = vmatmul.msk.bf16.vlgmr.msrb.gmra.mxu2 %vm243_vm11, %v2754_v24  ;;  %2758 = vmatmul.msk.bf16.vlgmr.msrb.gmra.mxu3 %vm243_vm11, %v2754_v24 }
 0x3bd   :  { %v1851_v23 = vpop.f32.mrf.mxu2  ;;  %v1864_v61 = vpop.f32.mrf.mxu3 }
 0x3be   :  { %v1920_v31 = vadd.f32 %v1851_v23, %v1793_v18  ;;  %v1921_v35 = vadd.f32 %v1864_v61, %v1794_v25 }
 0x3bf   :  { %v1877_v6 = vpop.f32.mrf.mxu0  ;;  %v1890_v12 = vpop.f32.mrf.mxu1 }
 0x3c0   :  { %v1922_v22 = vadd.f32 %v1877_v6, %v1795_v13  ;;  %v1923_v42 = vadd.f32 %v1890_v12, %v1796_v40 }
 0x3c2   :  { %2759 = vmatmul.msk.bf16.vlgmr.msra.gmra.mxu0 %vm243_vm11, %v2754_v24  ;;  %2760 = vmatmul.msk.bf16.vlgmr.msra.gmra.mxu1 %vm243_vm11, %v2754_v24 }
 0x3c5   :  { %v1853_v44 = vpop.f32.mrf.mxu2  ;;  %v1866_v46 = vpop.f32.mrf.mxu3 }
 0x3c7   :  { %v1879_v48 = vpop.f32.mrf.mxu0  ;;  %v1892_v14 = vpop.f32.mrf.mxu1 }
 0x3cd   :  { %v1903_v45 = vpop.f32.mrf.mxu2  ;;  %v1916_v49 = vpop.f32.mrf.mxu3 }
 0x3ce   :  { %v1924_v50 = vadd.f32 %v1903_v45, %v1797_v33  ;;  %v1925_v53 = vadd.f32 %v1916_v49, %v1798_v30 }
 0x3cf   :  { %v1976_v39 = vpop.f32.mrf.mxu0  ;;  %v1989_v54 = vpop.f32.mrf.mxu1 }
 0x3d0   :  { %v2045_v43 = vadd.f32 %v1976_v39, %v1920_v31  ;;  %v2046_v58 = vadd.f32 %v1989_v54, %v1921_v35 }
 0x3d5   :  { %v1905_v59 = vpop.f32.mrf.mxu2  ;;  %v1918_v60 = vpop.f32.mrf.mxu3 }
 0x3d6   :  { %v47_v59 = vpop.permute.xlu0 %46 }
 0x3d7   :  { %v1978_v62 = vpop.f32.mrf.mxu0  ;;  %v1991_v0 = vpop.f32.mrf.mxu1 }
 0x3d8   :  { %v2585_v0 = vpop.permute.xlu1 %2584 }
 0x3dd   :  { %v2002_v4 = vpop.f32.mrf.mxu2  ;;  %v2015_v2 = vpop.f32.mrf.mxu3 }
 0x3de   :  { %v2047_v29 = vadd.f32 %v2002_v4, %v1922_v22  ;;  %v2048_v52 = vadd.f32 %v2015_v2, %v1923_v42 }
 0x3df   :  { %v2028_v26 = vpop.f32.mrf.mxu0  ;;  %v2041_v5 = vpop.f32.mrf.mxu1 }
 0x3e0   :  { %v3551_v7 = vadd.f32 %v2028_v26, %v1924_v50  ;;  %v3553_v27 = vadd.f32 %v2041_v5, %v1925_v53  ;;  %v94_v26 = vadd.f32 %v2891_v38, %v47_v59  ;;  %v108_v5 = vadd.f32 %v2897_v41, %v47_v59 }
 0x3e5   :  { %v2004_v8 = vpop.f32.mrf.mxu2  ;;  %v2017_v20 = vpop.f32.mrf.mxu3 }
 0x3e7   :  { %v2030_v9 = vpop.f32.mrf.mxu0  ;;  %v2043_v10 = vpop.f32.mrf.mxu1 }
 0x3ed   :  { %v2125_v1 = vpop.f32.mrf.mxu2  ;;  %v2138_v18 = vpop.f32.mrf.mxu3 }
 0x3ee   :  { %v2194_v45 = vadd.f32 %v2125_v1, %v2045_v43  ;;  %v2195_v49 = vadd.f32 %v2138_v18, %v2046_v58 }
 0x3ef   :  { %v2151_v25 = vpop.f32.mrf.mxu0  ;;  %v2164_v37 = vpop.f32.mrf.mxu1 }
 0x3f0   :  { %v2196_v36 = vadd.f32 %v2151_v25, %v2047_v29  ;;  %v2197_v32 = vadd.f32 %v2164_v37, %v2048_v52 }
 0x3f5   :  { %v2127_v57 = vpop.f32.mrf.mxu2  ;;  %v2140_v3 = vpop.f32.mrf.mxu3 }
 0x3f7   :  { %v2153_v11 = vpop.f32.mrf.mxu0  ;;  %v2166_v28 = vpop.f32.mrf.mxu1 }
 0x3fd   :  { %v2177_v19 = vpop.f32.mrf.mxu2  ;;  %v2190_v13 = vpop.f32.mrf.mxu3 }
 0x3fe   :  { %v2198_v3 = vadd.f32 %v2177_v19, %v3551_v7  ;;  %v2199_v11 = vadd.f32 %v2190_v13, %v3553_v27 }
 0x3ff   :  { %v2252_v40 = vpop.f32.mrf.mxu0  ;;  %v2265_v15 = vpop.f32.mrf.mxu1 }
 0x400   :  { %v2321_v50 = vadd.f32 %v2252_v40, %v2194_v45  ;;  %v2322_v53 = vadd.f32 %v2265_v15, %v2195_v49 }
 0x405   :  { %v2179_v47 = vpop.f32.mrf.mxu2  ;;  %v2192_v24 = vpop.f32.mrf.mxu3 }
 0x407   :  { %v2254_v33 = vpop.f32.mrf.mxu0  ;;  %v2267_v30 = vpop.f32.mrf.mxu1 }
 0x40d   :  { %v2278_v16 = vpop.f32.mrf.mxu2  ;;  %v2291_v17 = vpop.f32.mrf.mxu3 }
 0x40e   :  { %v2323_v28 = vadd.f32 %v2278_v16, %v2196_v36  ;;  %v2324_v40 = vadd.f32 %v2291_v17, %v2197_v32  ;;  %v150_v16 = vadd.f32 %v3163_v55, %v47_v59  ;;  %v164_v17 = vadd.f32 %v3142_v34, %v47_v59 }
 0x40f   :  { %v2304_v21 = vpop.f32.mrf.mxu0  ;;  %v2317_v56 = vpop.f32.mrf.mxu1 }
 0x410   :  { %v2325_v38 = vadd.f32 %v2304_v21, %v2198_v3  ;;  %v2326_v41 = vadd.f32 %v2317_v56, %v2199_v11 }
 0x415   :  { %v2280_v23 = vpop.f32.mrf.mxu2  ;;  %v2293_v61 = vpop.f32.mrf.mxu3 }
 0x417   :  { %v2306_v31 = vpop.f32.mrf.mxu0  ;;  %v2319_v35 = vpop.f32.mrf.mxu1 }
 0x418   :  { %v122_v35 = vadd.f32 %v3159_v51, %v47_v59 }
 0x41d   :  { %v2379_v6 = vpop.f32.mrf.mxu2  ;;  %v2392_v12 = vpop.f32.mrf.mxu3 }
 0x41e   :  { %v2448_v60 = vadd.f32 %v2379_v6, %v2321_v50  ;;  %v2449_v62 = vadd.f32 %v2392_v12, %v2322_v53  ;;  %v136_v6 = vadd.f32 %v3168_v63, %v47_v59 }
 0x41f   :  { %v2405_v22 = vpop.f32.mrf.mxu0  ;;  %v2418_v42 = vpop.f32.mrf.mxu1 }
 0x420   :  { %v2450_v15 = vadd.f32 %v2405_v22, %v2323_v28  ;;  %v2451_v47 = vadd.f32 %v2418_v42, %v2324_v40 }
 0x425   :  { %v2381_v44 = vpop.f32.mrf.mxu2  ;;  %v2394_v46 = vpop.f32.mrf.mxu3 }
 0x427   :  { %v2407_v48 = vpop.f32.mrf.mxu0  ;;  %v2420_v14 = vpop.f32.mrf.mxu1 }
 0x42d   :  { %v2431_v39 = vpop.f32.mrf.mxu2  ;;  %v2444_v54 = vpop.f32.mrf.mxu3 }
 0x42e   :  { %v2452_v30 = vadd.f32 %v2431_v39, %v2325_v38  ;;  %v2453_v23 = vadd.f32 %v2444_v54, %v2326_v41 }
 0x42f   :  { %v2506_v4 = vpop.f32.mrf.mxu0  ;;  %v2519_v2 = vpop.f32.mrf.mxu1 }
 0x430   :  { %v2575_v29 = vadd.f32 %v2506_v4, %v2448_v60  ;;  %v2576_v52 = vadd.f32 %v2519_v2, %v2449_v62 }
 0x432   :  { %v2587_v8 = vadd.f32 %v2585_v0, %v2575_v29  ;;  %v2588_v20 = vadd.f32 %v2585_v0, %v2576_v52 }
 0x434   :  { %v2593_v43 = vadd.f32 %v2587_v8, %v94_v26  ;;  %v2594_v58 = vadd.f32 %v2588_v20, %v108_v5 }
 0x435   :  { %v2433_v9 = vpop.f32.mrf.mxu2  ;;  %v2446_v10 = vpop.f32.mrf.mxu3 }
 0x436   :  { %v2599_v1 = vmax.f32 %v2593_v43, 0.0  ;;  %v2600_v18 = vmax.f32 %v2594_v58, 0.0 }
 0x437   :  { %v2508_v25 = vpop.f32.mrf.mxu0  ;;  %v2521_v37 = vpop.f32.mrf.mxu1 }
 0x438   :  { %v2605_v57 = vpack.c.bf16 %v2600_v18, %v2599_v1 }
 0x43a   :  { %2608 = vst [vmem:[#allocation4] sm:$0xff] %v2605_v57 }
 0x43d   :  { %v2532_v24 = vpop.f32.mrf.mxu2  ;;  %v2545_v33 = vpop.f32.mrf.mxu3 }
 0x43e   :  { %v2577_v61 = vadd.f32 %v2532_v24, %v2450_v15  ;;  %v2578_v31 = vadd.f32 %v2545_v33, %v2451_v47 }
 0x43f   :  { %v2558_v7 = vpop.f32.mrf.mxu0  ;;  %v2571_v19 = vpop.f32.mrf.mxu1 }
 0x440   :  { %v2589_v27 = vadd.f32 %v2585_v0, %v2577_v61  ;;  %v2590_v36 = vadd.f32 %v2585_v0, %v2578_v31  ;;  %v2579_v32 = vadd.f32 %v2558_v7, %v2452_v30  ;;  %v2580_v13 = vadd.f32 %v2571_v19, %v2453_v23 }
 0x442   :  { %v2595_v21 = vadd.f32 %v2589_v27, %v122_v35  ;;  %v2596_v56 = vadd.f32 %v2590_v36, %v136_v6  ;;  %v2591_v12 = vadd.f32 %v2585_v0, %v2579_v32  ;;  %v2592_v22 = vadd.f32 %v2585_v0, %v2580_v13 }
 0x444   :  { %v2601_v42 = vmax.f32 %v2595_v21, 0.0  ;;  %v2602_v44 = vmax.f32 %v2596_v56, 0.0  ;;  %v2597_v46 = vadd.f32 %v2591_v12, %v150_v16  ;;  %v2598_v51 = vadd.f32 %v2592_v22, %v164_v17 }
 0x445   :  { %v2534_v48 = vpop.f32.mrf.mxu2  ;;  %v2547_v63 = vpop.f32.mrf.mxu3 }
 0x446   :  { %v2606_v14 = vpack.c.bf16 %v2602_v44, %v2601_v42  ;;  %v2603_v55 = vmax.f32 %v2597_v46, 0.0  ;;  %v2604_v45 = vmax.f32 %v2598_v51, 0.0 }
 0x447   :  { %v2560_v34 = vpop.f32.mrf.mxu0  ;;  %v2573_v49 = vpop.f32.mrf.mxu1 }
 0x448   :  { %2609 = vst [vmem:[#allocation4 + $0x8] sm:$0xff] %v2606_v14  ;;  %v2607_v50 = vpack.c.bf16 %v2604_v45, %v2603_v55 }
 0x44a   :  { %2610 = vst [vmem:[#allocation4 + $0x10] sm:$0xff] %v2607_v50 }
 0x44b   :  { %2621 = dma.vmem_to_hbm [thread:$0]  %s2617_s10, 384, %s2619_s0, [#allocation5]  }
 0x44c   :  { %2798 = dma.done.wait [#allocation5], 384  }
 0x44d   :  { %2799 = vsyncadd [#allocation5], 4294966912 }
 0x44e   :  { %2626 = vsyncpa [#allocation5], 1 }

</bundles_post_ra>
